<compile_context>
chip_gen: v6e
topology: v6e:2x2x1
jax: 0.10.0
libtpu: 0.0.40
codegen_flags: <defaults>
</compile_context>

<pallas_src>
import functools

import jax
import jax.numpy as jnp
from jax import lax
from jax.experimental import pallas as pl
from jax.experimental.pallas import tpu as pltpu


def _self_attn_kernel(x_ref, wqT_ref, wk_ref, wv_ref, bk_ref, bv_ref, gamma_ref,
                      o_ref, q_ref, acc_ref, *, tile_n):
    # x_ref   : (1, C, N)  one batch element (channel-major), resident over j
    # wqT_ref : (C, C8)    query weight in (in, out) layout (for a TN-free dot)
    # wk_ref  : (C8, C), wv_ref: (C, C)   PyTorch (out, in) layout
    # bk_ref  : (C8, 1), bv_ref: (C, 1)
    # gamma   : (1, 1) scalar in SMEM
    # o_ref   : (1, C, N)
    # q_ref   : (N, C8) bf16 scratch  (cached query projection)
    # acc_ref : (C, N)  f32 scratch   (output accumulator)
    j = pl.program_id(1)

    @pl.when(j == 0)
    def _init():
        # Query projection, computed once per batch element and kept resident.
        # The query bias is dropped: it shifts every score in a softmax column
        # by the same constant along the softmax axis i, so it cancels exactly.
        q = lax.dot_general(
            x_ref[0].astype(jnp.bfloat16),            # (C, N)
            wqT_ref[...].astype(jnp.bfloat16),        # (C, C8)
            dimension_numbers=(((0,), (0,)), ((), ())),
            preferred_element_type=jnp.float32)       # (N, C8)
        q_ref[...] = q.astype(jnp.bfloat16)
        acc_ref[...] = jnp.zeros_like(acc_ref)

    # Current key/value column tile of x: (C, tile_n).
    off = pl.multiple_of(j * tile_n, tile_n)
    xj = x_ref[0, :, pl.ds(off, tile_n)].astype(jnp.bfloat16)

    k = jnp.dot(wk_ref[...].astype(jnp.bfloat16), xj,
                preferred_element_type=jnp.float32) + bk_ref[...]    # (C8, Tn)
    v = jnp.dot(wv_ref[...].astype(jnp.bfloat16), xj,
                preferred_element_type=jnp.float32) + bv_ref[...]    # (C,  Tn)

    # Scores s[i, jj] = <q_i, k_jj>  (torch: bmm(query^T, key)).
    s = jnp.dot(q_ref[...], k.astype(jnp.bfloat16),
                preferred_element_type=jnp.float32)                  # (N, Tn)

    # Softmax over the query axis (torch dim=1). That axis is fully resident,
    # so every key-column tile normalizes independently (no online softmax).
    s = s - jnp.max(s, axis=0, keepdims=True)
    e = jnp.exp(s)
    a = e * pl.reciprocal(jnp.sum(e, axis=0, keepdims=True), approx=True)

    # out[c, i] += sum_jj v[c, jj] * a[i, jj]  -- contract the tile axis of both
    # operands directly (no transposed copy of `a`).
    acc_ref[...] += lax.dot_general(
        v.astype(jnp.bfloat16), a.astype(jnp.bfloat16),
        dimension_numbers=(((1,), (1,)), ((), ())),
        preferred_element_type=jnp.float32)                          # (C, N)

    @pl.when(j == pl.num_programs(1) - 1)
    def _finalize():
        o_ref[0] = (gamma_ref[0, 0] * acc_ref[...] + x_ref[0]).astype(o_ref.dtype)


def _pick_key_tile(n, max_tile=512):
    """Largest multiple of 128 (<= max_tile) that divides N; else fully resident."""
    if n <= max_tile:
        return n
    tn = (max_tile // 128) * 128
    while tn >= 128:
        if n % tn == 0:
            return tn
        tn -= 128
    return n


def self_attention(x_nchw, wq, bq, wk, bk, wv, bv, gamma, *, max_key_tile=512):
    """SAGAN self-attention forward.

    x_nchw : (B, C, H, W)
    wq, wk : (C//8, C)  1x1-conv weights, PyTorch (out_channels, in_channels)
    wv     : (C, C)
    bq, bk : (C//8,)    bv : (C,)    gamma : (1,)
    """
    B, C, H, W = x_nchw.shape
    N = H * W
    C8 = wq.shape[0]
    del bq  # exact: constant along the softmax axis -> cancels (see kernel).

    # Channel-major, lane-dense layout: a free reshape, no HBM transpose.
    x_bcn = x_nchw.reshape(B, C, N)

    tn = _pick_key_tile(N, max_key_tile)
    assert N % tn == 0
    grid = (B, N // tn)

    kernel = functools.partial(_self_attn_kernel, tile_n=tn)

    out_bcn = pl.pallas_call(
        kernel,
        out_shape=jax.ShapeDtypeStruct((B, C, N), x_nchw.dtype),
        grid=grid,
        in_specs=[
            pl.BlockSpec((1, C, N), lambda b, j: (b, 0, 0)),     # x (resident over j)
            pl.BlockSpec((C, C8), lambda b, j: (0, 0)),          # Wq^T (in, out)
            pl.BlockSpec((C8, C), lambda b, j: (0, 0)),          # Wk
            pl.BlockSpec((C, C), lambda b, j: (0, 0)),           # Wv
            pl.BlockSpec((C8, 1), lambda b, j: (0, 0)),          # bk
            pl.BlockSpec((C, 1), lambda b, j: (0, 0)),           # bv
            pl.BlockSpec((1, 1), lambda b, j: (0, 0),
                         memory_space=pltpu.MemorySpace.SMEM),   # gamma (scalar)
        ],
        out_specs=pl.BlockSpec((1, C, N), lambda b, j: (b, 0, 0)),
        scratch_shapes=[
            pltpu.VMEM((N, C8), jnp.bfloat16),   # cached query projection
            pltpu.VMEM((C, N), jnp.float32),     # f32 output accumulator
        ],
        compiler_params=pltpu.CompilerParams(
            dimension_semantics=("parallel", "arbitrary"),
            vmem_limit_bytes=64 * 1024 * 1024,   # explicit budget (fits v7x too)
        ),
    )(x_bcn, jnp.transpose(wq), wk, wv,
      bk.reshape(C8, 1), bv.reshape(C, 1), gamma.reshape(1, 1))

    return out_bcn.reshape(B, C, H, W)           # free reshape back to NCHW


def ref_self_attention(x, wq, bq, wk, bk, wv, bv, gamma):
    """Pure-JAX f32 reference mirroring the PyTorch forward exactly."""
    B, C, H, W = x.shape
    N = H * W
    xf = x.reshape(B, C, N)
    q = jnp.einsum('oc,bcn->bon', wq, xf) + bq[None, :, None]   # (B, C8, N)
    k = jnp.einsum('oc,bcn->bon', wk, xf) + bk[None, :, None]   # (B, C8, N)
    v = jnp.einsum('oc,bcn->bon', wv, xf) + bv[None, :, None]   # (B, C,  N)
    attn = jnp.einsum('bci,bcj->bij', q, k)                     # bmm(q^T, k)
    attn = jax.nn.softmax(attn, axis=1)                         # torch dim=1
    out = jnp.einsum('bcm,bkm->bck', v, attn)                   # bmm(v, attn^T)
    out = out.reshape(B, C, H, W)
    return gamma[0] * out + x


if __name__ == "__main__":
    B, C, H, W = 2, 32, 16, 16        # in_channels=32 -> C//8 = 4, N = 256
    C8 = C // 8

    key = jax.random.PRNGKey(0)
    kx, kq, kk, kv, kbq, kbk, kbv = jax.random.split(key, 7)

    x = jax.random.normal(kx, (B, C, H, W), dtype=jnp.float32)

    # Deterministic parameter init, PyTorch conv (out, in) weight layout.
    scale = 1.0 / jnp.sqrt(jnp.float32(C))
    wq = jax.random.normal(kq, (C8, C), dtype=jnp.float32) * scale
    wk = jax.random.normal(kk, (C8, C), dtype=jnp.float32) * scale
    wv = jax.random.normal(kv, (C, C), dtype=jnp.float32) * scale
    bq = jax.random.normal(kbq, (C8,), dtype=jnp.float32) * 0.1
    bk = jax.random.normal(kbk, (C8,), dtype=jnp.float32) * 0.1
    bv = jax.random.normal(kbv, (C,), dtype=jnp.float32) * 0.1
    # PyTorch inits gamma to zero (output == x); use a nonzero deterministic
    # value so the attention path is actually exercised.
    gamma = jnp.full((1,), 0.5, dtype=jnp.float32)

    out = self_attention(x, wq, bq, wk, bk, wv, bv, gamma)
    out = jax.block_until_ready(out)

    ref = ref_self_attention(x, wq, bq, wk, bk, wv, bv, gamma)
    assert out.shape == (B, C, H, W)
    # Kernel runs the MXU with bf16 operands (f32 accumulation) per the perf
    # review, so compare against the exact f32 reference with a bf16-appropriate
    # tolerance.
    err = float(jnp.max(jnp.abs(out - ref)))
    assert jnp.allclose(out, ref, atol=5e-2, rtol=5e-2), err

    print("KERNEL_OK")
</pallas_src>

<mosaic_0001>
module attributes {stable_mosaic.version = 11 : i64} {
  func.func @_self_attn_kernel(%arg0: i32, %arg1: i32, %arg2: memref<1x32x256xf32, #tpu.memory_space<vmem>>, %arg3: memref<32x4xf32, #tpu.memory_space<vmem>>, %arg4: memref<4x32xf32, #tpu.memory_space<vmem>>, %arg5: memref<32x32xf32, #tpu.memory_space<vmem>>, %arg6: memref<4x1xf32, #tpu.memory_space<vmem>>, %arg7: memref<32x1xf32, #tpu.memory_space<vmem>>, %arg8: memref<1x1xf32, #tpu.memory_space<smem>>, %arg9: memref<1x32x256xf32, #tpu.memory_space<vmem>>, %arg10: memref<256x4xbf16, #tpu.memory_space<vmem>>, %arg11: memref<32x256xf32, #tpu.memory_space<vmem>>) attributes {dimension_semantics = [#tpu.dimension_semantics<parallel>, #tpu.dimension_semantics<arbitrary>], iteration_bounds = array<i64: 2, 1>, scalar_prefetch = 0 : i64, scratch_operands = 2 : i64, tpu.core_type = #tpu.core_type<tc>, window_params = [{transform_indices = @transform_0, window_bounds = array<i64: 1, 32, 256>}, {pipeline_mode = #tpu.pipeline_mode<synchronous>, transform_indices = @transform_1, window_bounds = array<i64: 32, 4>}, {pipeline_mode = #tpu.pipeline_mode<synchronous>, transform_indices = @transform_2, window_bounds = array<i64: 4, 32>}, {pipeline_mode = #tpu.pipeline_mode<synchronous>, transform_indices = @transform_3, window_bounds = array<i64: 32, 32>}, {pipeline_mode = #tpu.pipeline_mode<synchronous>, transform_indices = @transform_4, window_bounds = array<i64: 4, 1>}, {pipeline_mode = #tpu.pipeline_mode<synchronous>, transform_indices = @transform_5, window_bounds = array<i64: 32, 1>}, {transform_indices = @transform_6, window_bounds = array<i64: 1, 1>}, {transform_indices = @transform_7, window_bounds = array<i64: 1, 32, 256>}]} {
    %c0_i32 = arith.constant 0 : i32
    %0 = arith.cmpi eq, %arg1, %c0_i32 : i32
    %1 = arith.extui %0 : i1 to i32
    %c0_i32_0 = arith.constant 0 : i32
    %2 = arith.cmpi ne, %1, %c0_i32_0 : i32
    scf.if %2 {
      %c0_23 = arith.constant 0 : index
      %c0_24 = arith.constant 0 : index
      %c0_25 = arith.constant 0 : index
      %43 = vector.load %arg2[%c0_23, %c0_24, %c0_25] : memref<1x32x256xf32, #tpu.memory_space<vmem>>, vector<1x32x256xf32>
      %44 = vector.shape_cast %43 : vector<1x32x256xf32> to vector<32x256xf32>
      %45 = arith.truncf %44 : vector<32x256xf32> to vector<32x256xbf16>
      %c0_26 = arith.constant 0 : index
      %c0_27 = arith.constant 0 : index
      %46 = vector.load %arg3[%c0_26, %c0_27] : memref<32x4xf32, #tpu.memory_space<vmem>>, vector<32x4xf32>
      %47 = arith.truncf %46 : vector<32x4xf32> to vector<32x4xbf16>
      %cst_28 = arith.constant dense<0.000000e+00> : vector<256x4xf32>
      %48 = tpu.matmul %45, %47, %cst_28 {dimension_numbers = #tpu.dot_dimension_numbers<[0], [0], [1], [1], [0, 1, 1, 1], [], []>} : vector<32x256xbf16>, vector<32x4xbf16>, vector<256x4xf32> -> vector<256x4xf32>
      %49 = arith.truncf %48 : vector<256x4xf32> to vector<256x4xbf16>
      %c0_29 = arith.constant 0 : index
      %c0_30 = arith.constant 0 : index
      %50 = vector.load %arg10[%c0_29, %c0_30] : memref<256x4xbf16, #tpu.memory_space<vmem>>, vector<256x4xbf16>
      tpu.vector_store %arg10[%c0_29, %c0_30], %49 {strides = array<i32>} : memref<256x4xbf16, #tpu.memory_space<vmem>>, vector<256x4xbf16>,
      %cst_31 = arith.constant 0.000000e+00 : f32
      %51 = vector.broadcast %cst_31 : f32 to vector<32x256xf32>
      %c0_32 = arith.constant 0 : index
      %c0_33 = arith.constant 0 : index
      %52 = vector.load %arg11[%c0_32, %c0_33] : memref<32x256xf32, #tpu.memory_space<vmem>>, vector<32x256xf32>
      tpu.vector_store %arg11[%c0_32, %c0_33], %51 {strides = array<i32>} : memref<32x256xf32, #tpu.memory_space<vmem>>, vector<32x256xf32>,
    } else {
    }
    %c256_i32 = arith.constant 256 : i32
    %3 = arith.muli %arg1, %c256_i32 : i32
    %4 = tpu.assume_multiple %3, 256 : i32
    %c0 = arith.constant 0 : index
    %c0_1 = arith.constant 0 : index
    %5 = arith.index_cast %4 : i32 to index
    %6 = vector.load %arg2[%c0, %c0_1, %5] : memref<1x32x256xf32, #tpu.memory_space<vmem>>, vector<1x32x256xf32>
    %7 = vector.shape_cast %6 : vector<1x32x256xf32> to vector<32x256xf32>
    %8 = arith.truncf %7 : vector<32x256xf32> to vector<32x256xbf16>
    %c0_2 = arith.constant 0 : index
    %c0_3 = arith.constant 0 : index
    %9 = vector.load %arg4[%c0_2, %c0_3] : memref<4x32xf32, #tpu.memory_space<vmem>>, vector<4x32xf32>
    %10 = arith.truncf %9 : vector<4x32xf32> to vector<4x32xbf16>
    %cst = arith.constant dense<0.000000e+00> : vector<4x256xf32>
    %11 = tpu.matmul %10, %8, %cst {dimension_numbers = #tpu.dot_dimension_numbers<[1], [0], [0], [1], [0, 0, 1, 1], [], []>} : vector<4x32xbf16>, vector<32x256xbf16>, vector<4x256xf32> -> vector<4x256xf32>
    %c0_4 = arith.constant 0 : index
    %c0_5 = arith.constant 0 : index
    %12 = vector.load %arg6[%c0_4, %c0_5] : memref<4x1xf32, #tpu.memory_space<vmem>>, vector<4x1xf32>
    %13 = vector.broadcast %12 : vector<4x1xf32> to vector<4x256xf32>
    %14 = arith.addf %11, %13 : vector<4x256xf32>
    %c0_6 = arith.constant 0 : index
    %c0_7 = arith.constant 0 : index
    %15 = vector.load %arg5[%c0_6, %c0_7] : memref<32x32xf32, #tpu.memory_space<vmem>>, vector<32x32xf32>
    %16 = arith.truncf %15 : vector<32x32xf32> to vector<32x32xbf16>
    %cst_8 = arith.constant dense<0.000000e+00> : vector<32x256xf32>
    %17 = tpu.matmul %16, %8, %cst_8 {dimension_numbers = #tpu.dot_dimension_numbers<[1], [0], [0], [1], [0, 0, 1, 1], [], []>} : vector<32x32xbf16>, vector<32x256xbf16>, vector<32x256xf32> -> vector<32x256xf32>
    %c0_9 = arith.constant 0 : index
    %c0_10 = arith.constant 0 : index
    %18 = vector.load %arg7[%c0_9, %c0_10] : memref<32x1xf32, #tpu.memory_space<vmem>>, vector<32x1xf32>
    %19 = vector.broadcast %18 : vector<32x1xf32> to vector<32x256xf32>
    %20 = arith.addf %17, %19 : vector<32x256xf32>
    %c0_11 = arith.constant 0 : index
    %c0_12 = arith.constant 0 : index
    %21 = vector.load %arg10[%c0_11, %c0_12] : memref<256x4xbf16, #tpu.memory_space<vmem>>, vector<256x4xbf16>
    %22 = arith.truncf %14 : vector<4x256xf32> to vector<4x256xbf16>
    %cst_13 = arith.constant dense<0.000000e+00> : vector<256x256xf32>
    %23 = tpu.matmul %21, %22, %cst_13 {dimension_numbers = #tpu.dot_dimension_numbers<[1], [0], [0], [1], [0, 0, 1, 1], [], []>} : vector<256x4xbf16>, vector<4x256xbf16>, vector<256x256xf32> -> vector<256x256xf32>
    %cst_14 = arith.constant dense<0xFF800000> : vector<256xf32>
    %24 = vector.multi_reduction <maximumf>, %23, %cst_14 [0] : vector<256x256xf32> to vector<256xf32>
    %25 = vector.shape_cast %24 : vector<256xf32> to vector<1x256xf32>
    %26 = vector.broadcast %25 : vector<1x256xf32> to vector<256x256xf32>
    %27 = arith.subf %23, %26 : vector<256x256xf32>
    %28 = math.exp %27 : vector<256x256xf32>
    %cst_15 = arith.constant dense<0.000000e+00> : vector<256xf32>
    %29 = vector.multi_reduction <add>, %28, %cst_15 [0] : vector<256x256xf32> to vector<256xf32>
    %30 = vector.shape_cast %29 : vector<256xf32> to vector<1x256xf32>
    %31 = tpu.reciprocal %30 {approx = true} : vector<1x256xf32> -> vector<1x256xf32>
    %32 = vector.broadcast %31 : vector<1x256xf32> to vector<256x256xf32>
    %33 = arith.mulf %28, %32 : vector<256x256xf32>
    %c0_16 = arith.constant 0 : index
    %c0_17 = arith.constant 0 : index
    %34 = vector.load %arg11[%c0_16, %c0_17] : memref<32x256xf32, #tpu.memory_space<vmem>>, vector<32x256xf32>
    %35 = arith.truncf %20 : vector<32x256xf32> to vector<32x256xbf16>
    %36 = arith.truncf %33 : vector<256x256xf32> to vector<256x256xbf16>
    %cst_18 = arith.constant dense<0.000000e+00> : vector<32x256xf32>
    %37 = tpu.matmul %35, %36, %cst_18 {dimension_numbers = #tpu.dot_dimension_numbers<[1], [1], [0], [0], [0, 0, 1, 0], [], []>} : vector<32x256xbf16>, vector<256x256xbf16>, vector<32x256xf32> -> vector<32x256xf32>
    %38 = arith.addf %34, %37 : vector<32x256xf32>
    %c0_19 = arith.constant 0 : index
    %c0_20 = arith.constant 0 : index
    %39 = vector.load %arg11[%c0_19, %c0_20] : memref<32x256xf32, #tpu.memory_space<vmem>>, vector<32x256xf32>
    tpu.vector_store %arg11[%c0_19, %c0_20], %38 {strides = array<i32>} : memref<32x256xf32, #tpu.memory_space<vmem>>, vector<32x256xf32>,
    %c0_i32_21 = arith.constant 0 : i32
    %40 = arith.cmpi eq, %arg1, %c0_i32_21 : i32
    %41 = arith.extui %40 : i1 to i32
    %c0_i32_22 = arith.constant 0 : i32
    %42 = arith.cmpi ne, %41, %c0_i32_22 : i32
    scf.if %42 {
      %c0_23 = arith.constant 0 : index
      %c0_24 = arith.constant 0 : index
      %43 = memref.load %arg8[%c0_23, %c0_24] : memref<1x1xf32, #tpu.memory_space<smem>>
      %c0_25 = arith.constant 0 : index
      %c0_26 = arith.constant 0 : index
      %44 = vector.load %arg11[%c0_25, %c0_26] : memref<32x256xf32, #tpu.memory_space<vmem>>, vector<32x256xf32>
      %45 = vector.broadcast %43 : f32 to vector<32x256xf32>
      %46 = arith.mulf %45, %44 : vector<32x256xf32>
      %c0_27 = arith.constant 0 : index
      %c0_28 = arith.constant 0 : index
      %c0_29 = arith.constant 0 : index
      %47 = vector.load %arg2[%c0_27, %c0_28, %c0_29] : memref<1x32x256xf32, #tpu.memory_space<vmem>>, vector<1x32x256xf32>
      %48 = vector.shape_cast %47 : vector<1x32x256xf32> to vector<32x256xf32>
      %49 = arith.addf %46, %48 : vector<32x256xf32>
      %c0_30 = arith.constant 0 : index
      %c0_31 = arith.constant 0 : index
      %c0_32 = arith.constant 0 : index
      %50 = vector.load %arg9[%c0_30, %c0_31, %c0_32] : memref<1x32x256xf32, #tpu.memory_space<vmem>>, vector<1x32x256xf32>
      %51 = vector.shape_cast %50 : vector<1x32x256xf32> to vector<32x256xf32>
      %52 = vector.shape_cast %49 : vector<32x256xf32> to vector<1x32x256xf32>
      tpu.vector_store %arg9[%c0_30, %c0_31, %c0_32], %52 {strides = array<i32>} : memref<1x32x256xf32, #tpu.memory_space<vmem>>, vector<1x32x256xf32>,
    } else {
    }
    return
  }
  func.func @transform_0(%arg0: i32, %arg1: i32) -> (i32, i32, i32) {
    %c0_i32 = arith.constant 0 : i32
    %c0_i32_0 = arith.constant 0 : i32
    %c0_i32_1 = arith.constant 0 : i32
    return %arg0, %c0_i32, %c0_i32_0 : i32, i32, i32
  }
  func.func @transform_1(%arg0: i32, %arg1: i32) -> (i32, i32) {
    %c0_i32 = arith.constant 0 : i32
    %c0_i32_0 = arith.constant 0 : i32
    %c0_i32_1 = arith.constant 0 : i32
    return %c0_i32, %c0_i32_0 : i32, i32
  }
  func.func @transform_2(%arg0: i32, %arg1: i32) -> (i32, i32) {
    %c0_i32 = arith.constant 0 : i32
    %c0_i32_0 = arith.constant 0 : i32
    %c0_i32_1 = arith.constant 0 : i32
    return %c0_i32, %c0_i32_0 : i32, i32
  }
  func.func @transform_3(%arg0: i32, %arg1: i32) -> (i32, i32) {
    %c0_i32 = arith.constant 0 : i32
    %c0_i32_0 = arith.constant 0 : i32
    %c0_i32_1 = arith.constant 0 : i32
    return %c0_i32, %c0_i32_0 : i32, i32
  }
  func.func @transform_4(%arg0: i32, %arg1: i32) -> (i32, i32) {
    %c0_i32 = arith.constant 0 : i32
    %c0_i32_0 = arith.constant 0 : i32
    %c0_i32_1 = arith.constant 0 : i32
    return %c0_i32, %c0_i32_0 : i32, i32
  }
  func.func @transform_5(%arg0: i32, %arg1: i32) -> (i32, i32) {
    %c0_i32 = arith.constant 0 : i32
    %c0_i32_0 = arith.constant 0 : i32
    %c0_i32_1 = arith.constant 0 : i32
    return %c0_i32, %c0_i32_0 : i32, i32
  }
  func.func @transform_6(%arg0: i32, %arg1: i32) -> (i32, i32) {
    %c0_i32 = arith.constant 0 : i32
    %c0_i32_0 = arith.constant 0 : i32
    %c0_i32_1 = arith.constant 0 : i32
    return %c0_i32, %c0_i32_0 : i32, i32
  }
  func.func @transform_7(%arg0: i32, %arg1: i32) -> (i32, i32, i32) {
    %c0_i32 = arith.constant 0 : i32
    %c0_i32_0 = arith.constant 0 : i32
    %c0_i32_1 = arith.constant 0 : i32
    return %arg0, %c0_i32, %c0_i32_0 : i32, i32, i32
  }
}

</mosaic_0001>

<bundles_post_ra>
// kernel: tpu_custom_call.1
= control target key start
LH: loop header
LB: loop body
LE: loop exit
PB: predicated region body
PF: predicated region fallthrough
CT: control target
= control target key end

     0   :  { %s3564_s0 = inlined_call_operand.hbm [shape: f32[2,32,256], index: 0, kind: input, shape index: {}]   ;;  %s3565_s1 = inlined_call_operand.vmem [shape: f32[32,4], index: 1, kind: input, shape index: {}]   ;;  %s3566_s2 = inlined_call_operand.vmem [shape: f32[4,32], index: 2, kind: input, shape index: {}]   ;;  %s3567_s3 = inlined_call_operand.vmem [shape: f32[32,32], index: 3, kind: input, shape index: {}]   ;;  %s3568_s4 = inlined_call_operand.vmem [shape: f32[4,1], index: 4, kind: input, shape index: {}]   ;;  %s3569_s5 = inlined_call_operand.vmem [shape: f32[32,1], index: 5, kind: input, shape index: {}]   ;;  %s3570_s6 = inlined_call_operand.<no memory space> [shape: f32[1,1], index: 6, kind: input, shape index: {}]   ;;  %s3571_s7 = inlined_call_operand.hbm [shape: f32[2,32,256], index: 7, kind: output, shape index: {}]  }
   0x1   :  { %12 = sst [smem:[#allocation4]] %s3570_s6 }
   0x2   :  { %13 = vsyncpa [#allocation6], 0 }
   0x3   :  { %15 = vsyncpa [#allocation6 + $0x1], 0 }
   0x4   :  { %16 = vsyncpa [#allocation7], 0 }
   0x5   :  { %18 = vsyncpa [#allocation7 + $0x1], 0  ;;  %s2491_s26 = smov 0   ;;  %s2493_s27 = smov 0  }
   0x6   :  { %s2495_s28 = smov 0   ;;  %s2497_s29 = smov 0  }
   0x7   :  { %s2499_s30 = smov 0   ;;  %s2501_s8 = smov 0  }
   0x8 LB: > { %s1927_s6 = sadd.s32 4294967295, %s2439_s8   ;;  %s1928_s9 = sadd.s32 4294967294, %s2439_s8   ;;  %s2439_s8 = sphi %s2501_s8, %s24_s8   ;;  %s2435_s30 = sphi %s2499_s30, %s3690_s30   ;;  %s2431_s29 = sphi %s2497_s29, %s3689_s29   ;;  %s2427_s28 = sphi %s2495_s28, %s3688_s28   ;;  %s2423_s27 = sphi %s2493_s27, %s3687_s27   ;;  %s2419_s26 = sphi %s2491_s26, %s3686_s26  }
   0x9   : > { %s36_s10 = sadd.s32 1, %s2435_s30  ;;  %s43_s11 = sadd.s32 1, %s2427_s28 }
   0xa   : > { %p38_p0 = scmp.ge.s32.totalorder %s36_s10, 2  ;;  %p50_p1 = scmp.ne.s32.totalorder %s2427_s28, %s2423_s27 }
   0xb   : > { %p51_p2 = scmp.eq.s32.totalorder %s2439_s8, 0  ;;  %p56_p3 = scmp.ne.s32.totalorder %s2423_s27, %s2419_s26 }
   0xc   : > { %s3692_s10 = smov (%p38_p0, %s36_s10), 0  ;;  %p57_p5 = scmp.eq.s32.totalorder %s1927_s6, 0 }
   0xd   : > { %p2532_p4 = por %p51_p2, %p50_p1  ;;  %s40_s13 = ssub.s32 %s2435_s30, %s3692_s10 }
   0xe   : > { %p206_p6 = scmp.eq.s32.totalorder %s1927_s6, 1  ;;  %p41_p7 = scmp.eq.s32.totalorder %s40_s13, 0 }
   0xf   : > { %p2538_p8 = por %p57_p5, %p56_p3  ;;  %p212_p10 = scmp.eq.s32.totalorder %s1928_s9, 1 }
  0x10   : > { %p2542_p9 = por %p206_p6, %p50_p1  ;;  %p2126_p13 = scmp.lt.s32.totalorder %s2439_s8, 2 }
  0x11   : > { %s2547_s16 = scalar_select %p41_p7, %s2427_s28, %s43_s11  }
  0x12   : > { %p2549_p11 = por %p212_p10, %p56_p3  ;;  %s250_s18 = sand.u32 1, %s2427_s28  }
  0x13   : > { %s1931_s19 = sshll.u32 %s250_s18, 6  ;;  %s2026_s20 = sshll.u32 %s2435_s30, 10 }
  0x14   : > { %s260_s23 = scalar_lea.hbm %s3564_s0, %s2026_s20  ;;  %s254_s24 = scalar_lea.vmem [#allocation5], %s1931_s19 }
  0x15   : > { %s261_s25 = sshll.u32 %s254_s24, 4  ;;  %p2562_p0 = pnand %p2126_p13, %p2532_p4  ;;  %s262_s25 = int_to_ptr.vmem [resolvable:$true] %s261_s25 }
  0x16   : > { %p1934_p1 = scmp.ge.s32.totalorder %s2439_s8, 1  ;;  %s251_s9 = scalar_lea.sflag [#allocation6], %s250_s18 }
  0x17   : > { %p2333_p2 = pneg %p2562_p0  ;;  %s2344_s11 = scalar_lea.vmem %s262_s25, 1024 }
  0x18   : > { %p2345_p3 = scmp.ne.s32.totalorder %s262_s25, %s2344_s11  ;;  %s2441_s13 = smov [#allocation5]  }
  0x19   : > { %s2349_s21 = sshll.u32 %s2441_s13, 4  ;;  %s2350_s21 = int_to_ptr.vmem [resolvable:$false] %s2349_s21 }
  0x1a   : > { %p2347_p5 = pnand %p2345_p3, %p2333_p2  ;;  %s2351_s19 = scalar_lea.vmem %s2350_s21, 2048 }
  0x1b   : > { %p2352_p7 = scmp.lt.s32.totalorder %s262_s25, %s2350_s21  ;;  %p2353_p10 = scmp.lt.s32.totalorder %s2351_s19, %s2344_s11 }
  0x1c   : > { %p2348_p6 = pneg %p2347_p5 }
  0x1d   : > { %p2354_p12 = por %p2353_p10, %p2352_p7 }
  0x1f   : > { %p2355_p4 = pnand %p2354_p12, %p2348_p6 }
  0x21   : > { %2358 = shalt.err (!%p2355_p4)
}
  0x22   : > { %s2442_s12 = smov 256   ;;  %s2443_s18 = smov 16  }
  0x23   : > { %2121 = dma.hbm_to_vmem [thread:$0]  (!%p2562_p0), %s260_s23, 1024, %s262_s25, %s251_s9, %s2442_s12, %s2442_s12, %s2443_s18  }
  0x24   : > { %p269_p13 = scmp.lt.s32.totalorder %s2439_s8, 3 }
  0x26   : > { %p270_p2 = pnand %p1934_p1, %p269_p13 }
  0x28   : > { %273 = sbr.rel (%p270_p2) target bundleno = 1192 (0x4a8), region = 48 }
  0x2d   : > { %s2575_s20 = sand.u32 1, %s2423_s27  }
  0x2e   : > { %s1935_s22 = sshll.u32 %s2575_s20, 6  ;;  %s276_s24 = scalar_lea.sflag [#allocation6], %s2575_s20 }
  0x2f   : > { %s2581_s11 = scalar_lea.vmem [#allocation5], %s1935_s22 }
  0x30   : > { %2410 = dma.done.wait (%p2538_p8), %s276_s24, 1024  }
  0x31   : > { %2412 = vsyncadd (%p2538_p8), %s276_s24, 4294966272  ;;  %v2444_v0 = vmov 0   ;;  %v315_v1 = vld [vmem:[%s2581_s11] sm:$0xff]  ;;  %v317_v2 = vld [vmem:[%s2581_s11 + $0x10] sm:$0xff]  ;;  %vm365_vm0 = vcmask 261120   ;;  %vm1066_vm1 = vcmask 1041408  }
  0x32   : > { %805 = vmatprep.mubr.bf16.mxu1 %v2444_v0  ;;  %v319_v3 = vld [vmem:[%s2581_s11 + $0x20] sm:$0xff]  ;;  %v323_v4 = vpack.c.bf16 %v317_v2, %v315_v1  ;;  %v321_v5 = vld [vmem:[%s2581_s11 + $0x30] sm:$0xff]  ;;  %v316_v6 = vld [vmem:[%s2581_s11 + $0x8] sm:$0xff]  ;;  %vm703_vm2 = vcmask 27648   ;;  %vm1017_vm3 = vcmask 31744   ;;  %s1788_s21 = sld [smem:[#allocation4]] }
  0x33   : > { %v318_v7 = vld [vmem:[%s2581_s11 + $0x18] sm:$0xff]  ;;  %v320_v9 = vld [vmem:[%s2581_s11 + $0x28] sm:$0xff]  ;;  %v325_v11 = vpack.c.bf16 %v321_v5, %v319_v3  ;;  %v329_v13 = vld [vmem:[%s3565_s1 + $0x10] sm:$0xff]  ;;  %s3494_s19 = scalar_lea.vmem [#allocation8], %s1935_s22  ;;  %s2059_s12 = sshll.u32 %s2431_s29, 10 }
  0x34   : > { %v324_v8 = vpack.c.bf16 %v318_v7, %v316_v6  ;;  %v322_v10 = vld [vmem:[%s2581_s11 + $0x38] sm:$0xff]  ;;  %333 = vxpose.xlu0.c.b16.start [1/2] (short) %v323_v4, 128  ;;  %v327_v16 = vld [vmem:[%s3565_s1] sm:$0xff]  ;;  %v328_v17 = vld [vmem:[%s3565_s1 + $0x8] sm:$0xff]  ;;  %s1844_s22 = sshll.u32 %s3494_s19, 4  ;;  %s3514_s14 = scalar_lea.hbm %s3571_s7, %s2059_s12  ;;  %s3508_s22 = int_to_ptr.vmem [resolvable:$true] %s1844_s22 }
  0x35   : > { %v326_v12 = vpack.c.bf16 %v322_v10, %v320_v9  ;;  %v330_v14 = vld [vmem:[%s3565_s1 + $0x18] sm:$0xff]  ;;  %v761_v18 = vld [vmem:[%s3566_s2] sm:$0xf]  ;;  %v331_v19 = vpack.c.bf16 %v328_v17, %v327_v16  ;;  %v815_v22 = vld [vmem:[%s3567_s3 + $0x8] sm:$0xff]  ;;  %s1831_s23 = scalar_lea.sflag [#allocation7], %s2575_s20  ;;  %s2359_s29 = scalar_lea.vmem %s3508_s22, 1024 }
  0x36   : > { %349 = vxpose.xlu1.c.b16.start [1/2] (short) %v324_v8, 128  ;;  %v332_v15 = vpack.c.bf16 %v330_v14, %v329_v13  ;;  %v762_v20 = vpack.c.bf16 %v761_v18, %v761_v18  ;;  %v814_v21 = vld [vmem:[%s3567_s3] sm:$0xff]  ;;  %v816_v24 = vld [vmem:[%s3567_s3 + $0x10] sm:$0xff]  ;;  %v817_v25 = vld [vmem:[%s3567_s3 + $0x18] sm:$0xff]  ;;  %p2360_p8 = scmp.ne.s32.totalorder %s3508_s22, %s2359_s29 }
  0x37   : > { %785 = vmatprep.subr.bf16.mxu1 %v326_v12  ;;  %v818_v23 = vpack.c.bf16 %v815_v22, %v814_v21  ;;  %v819_v26 = vpack.c.bf16 %v817_v25, %v816_v24  ;;  %v820_v27 = vld [vmem:[%s3569_s5] sm:$0xff]  ;;  %v821_v28 = vld [vmem:[%s3569_s5 + $0x8] sm:$0xff]  ;;  %v822_v30 = vld [vmem:[%s3569_s5 + $0x10] sm:$0xff] }
  0x38   : > { %786 = vmatpush1.bf16.msra.mxu1 %v325_v11  ;;  %334 = vxpose.xlu0.c.b16.end [2/2] (short) %v325_v11, 128  ;;  %v763_v29 = vld [vmem:[%s3568_s4] sm:$0xf]  ;;  %v823_v31 = vld [vmem:[%s3569_s5 + $0x18] sm:$0xff]  ;;  %p2361_p12 = pnand %p2360_p8, %p2542_p9 }
  0x39   : > { %787 = vmatprep.subr.bf16.mxu1 %v324_v8  ;;  %2078 = vmatprep.subr.bf16.mxu0 %v332_v15 }
  0x3a   : > { %350 = vxpose.xlu1.c.b16.end [2/2] (short) %v326_v12, 128  ;;  %2079 = vmatpush3.bf16.msra.mxu0 %v332_v15  ;;  %p2362_p0 = pneg %p2361_p12 }
  0x3b   : > { %2080 = vmatprep.subr.bf16.mxu0 %v331_v19 }
  0x3c   : > { %788 = vmatpush1.bf16.msra.mxu1 %v323_v4 }
  0x3d   : > { %862 = vmatprep.subr.bf16.mxu1 %v326_v12 }
  0x3e   : > { %2182 = vset.pattern.permute.xlu1 %v2444_v0  ;;  %2081 = vmatpush3.bf16.msra.mxu0 %v331_v19 }
  0x3f   : > { %1985 = vmatmul.mubr.msk.bf16.vlgmr.msra.gmra.mxu1 %vm365_vm0, %v762_v20 }
  0x40   : > { %863 = vmatpush1.bf16.msra.mxu1 %v325_v11  ;;  %882 = vmatprep.mubr.bf16.mxu1 %v2444_v0 }
  0x41   : > { %864 = vmatprep.subr.bf16.mxu1 %v324_v8  ;;  %2181 = vset.pattern.permute.xlu0 %v2444_v0 }
  0x44   : > { %865 = vmatpush1.bf16.msra.mxu1 %v323_v4 }
  0x47   : > { %1986 = vmatmul.mubr.msk.bf16.vlgmr.msra.gmra.mxu1 %vm365_vm0, %v818_v23 }
  0x48   : > { %892 = vmatprep.mubr.bf16.mxu1 %v2444_v0 }
  0x4f   : > { %1987 = vmatmul.mubr.msk.bf16.gmra.mxu1 %vm365_vm0, %v819_v26 }
  0x50   : > { %1105 = vmatprep.mubr.bf16.mxu1 %v2444_v0 }
  0x56   : > { %826 = vperm.xlu1 %2182, %v820_v27  }
  0x59   : > { %766 = vperm.xlu0 %2181, %v763_v29  }
  0x5a   : > { %831 = vperm.xlu1 %2182, %v821_v28  }
  0x5d   : > { %841 = vperm.xlu0 %2181, %v823_v31  }
  0x5e   : > { %836 = vperm.xlu1 %2182, %v822_v30  }
  0x96   : > { %v341_v32 = vpop.trf.xlu0 }
  0x97   : > { %2082 = vmatprep.mubr.msk.bf16.mxu0 %vm365_vm0, %v341_v32 }
  0x98   : > { %v357_v38 = vpop.trf.xlu1 }
  0x9a   : > { %v342_v33 = vpop.trf.xlu0 }
  0x9b   : > { %2083 = vmatmul.mubr.msk.bf16.vlgmr.msra.gmra.mxu0 %vm365_vm0, %v342_v33 }
  0x9c   : > { %v358_v41 = vpop.trf.xlu1 }
  0x9e   : > { %v343_v34 = vpop.trf.xlu0 }
  0x9f   : > { %2086 = vmatprep.mubr.msk.bf16.mxu0 %vm365_vm0, %v343_v34 }
  0xa0   : > { %v359_v42 = vpop.trf.xlu1 }
  0xa2   : > { %v344_v35 = vpop.trf.xlu0 }
  0xa3   : > { %2087 = vmatmul.mubr.msk.bf16.gmra.mxu0 %vm365_vm0, %v344_v35 }
  0xa4   : > { %v360_v43 = vpop.trf.xlu1 }
  0xa6   : > { %v345_v36 = vpop.trf.xlu0 }
  0xa7   : > { %2090 = vmatprep.mubr.msk.bf16.mxu0 %vm365_vm0, %v345_v36 }
  0xa8   : > { %v361_v44 = vpop.trf.xlu1 }
  0xaa   : > { %v346_v37 = vpop.trf.xlu0 }
  0xab   : > { %2091 = vmatmul.mubr.msk.bf16.gmra.mxu0 %vm365_vm0, %v346_v37 }
  0xac   : > { %v362_v45 = vpop.trf.xlu1 }
  0xae   : > { %v347_v39 = vpop.trf.xlu0 }
  0xaf   : > { %2094 = vmatprep.mubr.msk.bf16.mxu0 %vm365_vm0, %v347_v39 }
  0xb0   : > { %v363_v46 = vpop.trf.xlu1 }
  0xb2   : > { %v348_v40 = vpop.trf.xlu0 }
  0xb3   : > { %2095 = vmatmul.mubr.msk.bf16.gmra.mxu0 %vm365_vm0, %v348_v40 }
  0xb4   : > { %2098 = vmatprep.mubr.msk.bf16.mxu0 %vm365_vm0, %v357_v38  ;;  %v364_v47 = vpop.trf.xlu1 }
  0xbb   : > { %2099 = vmatmul.mubr.msk.bf16.gmra.mxu0 %vm365_vm0, %v358_v41 }
  0xbc   : > { %2102 = vmatprep.mubr.msk.bf16.mxu0 %vm365_vm0, %v359_v42 }
  0xc3   : > { %2103 = vmatmul.mubr.msk.bf16.gmra.mxu0 %vm365_vm0, %v360_v43 }
  0xc4   : > { %2106 = vmatprep.mubr.msk.bf16.mxu0 %vm365_vm0, %v361_v44 }
  0xcb   : > { %2107 = vmatmul.mubr.msk.bf16.gmra.mxu0 %vm365_vm0, %v362_v45 }
  0xcc   : > { %2110 = vmatprep.mubr.msk.bf16.mxu0 %vm365_vm0, %v363_v46 }
  0xd1   : > { %v827_v55 = vpop.permute.xlu1 %826 }
  0xd3   : > { %2111 = vmatmul.mubr.msk.bf16.gmra.mxu0 %vm365_vm0, %v364_v47 }
  0xd4   : > { %v767_v49 = vpop.permute.xlu0 %766 }
  0xd5   : > { %v832_v62 = vpop.permute.xlu1 %831 }
  0xd8   : > { %v2672_v10 = vpop.permute.xlu0 %841 }
  0xd9   : > { %v2668_v7 = vpop.permute.xlu1 %836  ;;  %3613 = vst [vmem:[#allocation15_spill] sm:$0xff] %v2672_v10 }
  0xda   : > { %3611 = vst [vmem:[#allocation13_spill] sm:$0xff] %v2668_v7 }
  0xff   : > { %v807_v48 = vpop.f32.mrf.mxu1 }
 0x100   : > { %v808_v50 = vadd.f32 %v807_v48, %v767_v49 }
 0x101   : > { %v809_v51 = vpop.f32.mrf.mxu1 }
 0x102   : > { %v810_v52 = vadd.f32 %v809_v51, %v767_v49  ;;  %v935_v53 = vpack.c.bf16 %v808_v50, %v808_v50 }
 0x103   : > { %v811_v54 = vpop.f32.mrf.mxu1 }
 0x104   : > { %v936_v56 = vpack.c.bf16 %v810_v52, %v810_v52  ;;  %v1068_v57 = vsel %vm1066_vm1, %v935_v53, 0 }
 0x105   : > { %v812_v58 = vpop.f32.mrf.mxu1 }
 0x106   : > { %2004 = vmatprep.subr.msk.bf16.mxu1 %vm1066_vm1, %v936_v56 }
 0x107   : > { %v884_v59 = vpop.f32.mrf.mxu1  ;;  %1088 = vmatpush1.bf16.msra.mxu1 %v1068_v57 }
 0x108   : > { %v2662_v60 = vadd.f32 %v884_v59, %v827_v55 }
 0x109   : > { %v886_v61 = vpop.f32.mrf.mxu1 }
 0x10a   : > { %3609 = vst [vmem:[#allocation11_spill] sm:$0xff] %v2662_v60  ;;  %v887_v1 = vadd.f32 %v886_v61, %v827_v55 }
 0x10b   : > { %v888_v63 = vpop.f32.mrf.mxu1 }
 0x10c   : > { %v2664_v2 = vadd.f32 %v888_v63, %v832_v62 }
 0x10d   : > { %v890_v3 = vpop.f32.mrf.mxu1 }
 0x10e   : > { %3610 = vst [vmem:[#allocation12_spill] sm:$0xff] %v2664_v2  ;;  %v891_v4 = vadd.f32 %v890_v3, %v832_v62 }
 0x10f   : > { %v894_v6 = vpop.f32.mrf.mxu1 }
 0x110   : > { %v1681_v8 = vpack.c.bf16 %v891_v4, %v887_v1  ;;  %v2675_v11 = vadd.f32 %v894_v6, %v2668_v7 }
 0x111   : > { %v2670_v9 = vpop.f32.mrf.mxu1 }
 0x112   : > { %3612 = vst [vmem:[#allocation14_spill] sm:$0xff] %v2670_v9  ;;  %3614 = vst [vmem:[#allocation16_spill] sm:$0xff] %v2675_v11  ;;  %1748 = vmatprep.mubr.bf16.mxu0 %v1681_v8 }
 0x113   : > { %v898_v12 = vpop.f32.mrf.mxu1 }
 0x114   : > { %v2678_v13 = vadd.f32 %v898_v12, %v2672_v10 }
 0x116   : > { %3615 = vst [vmem:[#allocation17_spill] sm:$0xff] %v2678_v13 }
 0x15b   : > { %v2084_v15 = vpop.f32.mrf.mxu0 }
 0x15c   : > { %v2029_v16 = vpack.c.bf16 %v2084_v15, %v2084_v15 }
 0x15d   : > { %v448_v17 = vpop.f32.mrf.mxu0 }
 0x15e   : > { %706 = vst.msk [vmem:[#allocation2 + $0x8] sm:$0xf] %vm703_vm2, %v2029_v16  ;;  %v2027_v18 = vpack.c.bf16 %v448_v17, %v448_v17 }
 0x15f   : > { %v2085_v19 = vpop.f32.mrf.mxu0 }
 0x160   : > { %704 = vst.msk [vmem:[#allocation2] sm:$0xf] %vm703_vm2, %v2027_v18  ;;  %v2030_v20 = vpack.c.bf16 %v2085_v19, %v2085_v19 }
 0x161   : > { %v451_v21 = vpop.f32.mrf.mxu0 }
 0x162   : > { %707 = vst.msk [vmem:[#allocation2 + $0xc] sm:$0xf] %vm703_vm2, %v2030_v20  ;;  %v2028_v22 = vpack.c.bf16 %v451_v21, %v451_v21 }
 0x163   : > { %v2088_v23 = vpop.f32.mrf.mxu0 }
 0x164   : > { %705 = vst.msk [vmem:[#allocation2 + $0x4] sm:$0xf] %vm703_vm2, %v2028_v22  ;;  %v2033_v24 = vpack.c.bf16 %v2088_v23, %v2088_v23 }
 0x165   : > { %v464_v25 = vpop.f32.mrf.mxu0 }
 0x166   : > { %710 = vst.msk [vmem:[#allocation2 + $0x18] sm:$0xf] %vm703_vm2, %v2033_v24  ;;  %v2031_v26 = vpack.c.bf16 %v464_v25, %v464_v25 }
 0x167   : > { %v2089_v27 = vpop.f32.mrf.mxu0 }
 0x168   : > { %708 = vst.msk [vmem:[#allocation2 + $0x10] sm:$0xf] %vm703_vm2, %v2031_v26  ;;  %v2034_v28 = vpack.c.bf16 %v2089_v27, %v2089_v27 }
 0x169   : > { %v467_v29 = vpop.f32.mrf.mxu0  ;;  %v2184_v40 = vld [vmem:[#allocation2 + $0x8] sm:$0xff]  }
 0x16a   : > { %711 = vst.msk [vmem:[#allocation2 + $0x1c] sm:$0xf] %vm703_vm2, %v2034_v28  ;;  %v2032_v30 = vpack.c.bf16 %v467_v29, %v467_v29 }
 0x16b   : > { %v2183_v31 = vld [vmem:[#allocation2] sm:$0xff]   ;;  %v2092_v32 = vpop.f32.mrf.mxu0 }
 0x16c   : > { %709 = vst.msk [vmem:[#allocation2 + $0x14] sm:$0xf] %vm703_vm2, %v2032_v30  ;;  %v2037_v33 = vpack.c.bf16 %v2092_v32, %v2092_v32  ;;  %2005 = vmatmul.mubr.msk.bf16.vlgmr.msra.gmra.mxu1 %vm1017_vm3, %v2183_v31 }
 0x16d   : > { %v480_v34 = vpop.f32.mrf.mxu0  ;;  %1115 = vmatprep.mubr.bf16.mxu1 %v2444_v0 }
 0x16e   : > { %714 = vst.msk [vmem:[#allocation2 + $0x28] sm:$0xf] %vm703_vm2, %v2037_v33  ;;  %v2035_v35 = vpack.c.bf16 %v480_v34, %v480_v34 }
 0x16f   : > { %v2093_v36 = vpop.f32.mrf.mxu0 }
 0x170   : > { %712 = vst.msk [vmem:[#allocation2 + $0x20] sm:$0xf] %vm703_vm2, %v2035_v35  ;;  %v2038_v37 = vpack.c.bf16 %v2093_v36, %v2093_v36 }
 0x171   : > { %v483_v38 = vpop.f32.mrf.mxu0  ;;  %v2186_v58 = vld [vmem:[#allocation2 + $0x18] sm:$0xff]  }
 0x172   : > { %715 = vst.msk [vmem:[#allocation2 + $0x2c] sm:$0xf] %vm703_vm2, %v2038_v37  ;;  %v2036_v39 = vpack.c.bf16 %v483_v38, %v483_v38 }
 0x173   : > { %v2096_v41 = vpop.f32.mrf.mxu0  ;;  %v2185_v49 = vld [vmem:[#allocation2 + $0x10] sm:$0xff]  }
 0x174   : > { %713 = vst.msk [vmem:[#allocation2 + $0x24] sm:$0xf] %vm703_vm2, %v2036_v39  ;;  %v2041_v42 = vpack.c.bf16 %v2096_v41, %v2096_v41  ;;  %2006 = vmatmul.mubr.msk.bf16.gmra.mxu1 %vm1017_vm3, %v2184_v40  ;;  %v2745_v41 = vpop.f32.mrf.mxu1 }
 0x175   : > { %v496_v43 = vpop.f32.mrf.mxu0  ;;  %1125 = vmatprep.mubr.bf16.mxu1 %v2444_v0  ;;  %3616 = vst [vmem:[#allocation18_spill] sm:$0xff] %v2745_v41 }
 0x176   : > { %718 = vst.msk [vmem:[#allocation2 + $0x38] sm:$0xf] %vm703_vm2, %v2041_v42  ;;  %v2039_v44 = vpack.c.bf16 %v496_v43, %v496_v43 }
 0x177   : > { %v2097_v45 = vpop.f32.mrf.mxu0 }
 0x178   : > { %716 = vst.msk [vmem:[#allocation2 + $0x30] sm:$0xf] %vm703_vm2, %v2039_v44  ;;  %v2042_v46 = vpack.c.bf16 %v2097_v45, %v2097_v45 }
 0x179   : > { %v499_v47 = vpop.f32.mrf.mxu0  ;;  %v2188_v22 = vld [vmem:[#allocation2 + $0x28] sm:$0xff]  }
 0x17a   : > { %719 = vst.msk [vmem:[#allocation2 + $0x3c] sm:$0xf] %vm703_vm2, %v2042_v46  ;;  %v2040_v48 = vpack.c.bf16 %v499_v47, %v499_v47 }
 0x17b   : > { %v2100_v50 = vpop.f32.mrf.mxu0  ;;  %v2187_v8 = vld [vmem:[#allocation2 + $0x20] sm:$0xff]  }
 0x17c   : > { %717 = vst.msk [vmem:[#allocation2 + $0x34] sm:$0xf] %vm703_vm2, %v2040_v48  ;;  %v2045_v51 = vpack.c.bf16 %v2100_v50, %v2100_v50  ;;  %2007 = vmatmul.mubr.msk.bf16.gmra.mxu1 %vm1017_vm3, %v2185_v49 }
 0x17d   : > { %v512_v52 = vpop.f32.mrf.mxu0  ;;  %1135 = vmatprep.mubr.bf16.mxu1 %v2444_v0 }
 0x17e   : > { %722 = vst.msk [vmem:[#allocation2 + $0x48] sm:$0xf] %vm703_vm2, %v2045_v51  ;;  %v2043_v53 = vpack.c.bf16 %v512_v52, %v512_v52 }
 0x17f   : > { %v2101_v54 = vpop.f32.mrf.mxu0 }
 0x180   : > { %720 = vst.msk [vmem:[#allocation2 + $0x40] sm:$0xf] %vm703_vm2, %v2043_v53  ;;  %v2046_v55 = vpack.c.bf16 %v2101_v54, %v2101_v54 }
 0x181   : > { %v515_v56 = vpop.f32.mrf.mxu0  ;;  %v2190_v32 = vld [vmem:[#allocation2 + $0x38] sm:$0xff]  }
 0x182   : > { %723 = vst.msk [vmem:[#allocation2 + $0x4c] sm:$0xf] %vm703_vm2, %v2046_v55  ;;  %v2044_v57 = vpack.c.bf16 %v515_v56, %v515_v56 }
 0x183   : > { %v2104_v59 = vpop.f32.mrf.mxu0  ;;  %v2189_v31 = vld [vmem:[#allocation2 + $0x30] sm:$0xff]  }
 0x184   : > { %721 = vst.msk [vmem:[#allocation2 + $0x44] sm:$0xf] %vm703_vm2, %v2044_v57  ;;  %v2049_v61 = vpack.c.bf16 %v2104_v59, %v2104_v59  ;;  %2008 = vmatmul.mubr.msk.bf16.gmra.mxu1 %vm1017_vm3, %v2186_v58 }
 0x185   : > { %v528_v62 = vpop.f32.mrf.mxu0  ;;  %1145 = vmatprep.mubr.bf16.mxu1 %v2444_v0 }
 0x186   : > { %726 = vst.msk [vmem:[#allocation2 + $0x58] sm:$0xf] %vm703_vm2, %v2049_v61  ;;  %v2047_v63 = vpack.c.bf16 %v528_v62, %v528_v62 }
 0x187   : > { %v2105_v1 = vpop.f32.mrf.mxu0 }
 0x188   : > { %724 = vst.msk [vmem:[#allocation2 + $0x50] sm:$0xf] %vm703_vm2, %v2047_v63  ;;  %v2050_v3 = vpack.c.bf16 %v2105_v1, %v2105_v1 }
 0x189   : > { %v531_v4 = vpop.f32.mrf.mxu0  ;;  %v2192_v34 = vld [vmem:[#allocation2 + $0x48] sm:$0xff]  }
 0x18a   : > { %727 = vst.msk [vmem:[#allocation2 + $0x5c] sm:$0xf] %vm703_vm2, %v2050_v3  ;;  %v2048_v6 = vpack.c.bf16 %v531_v4, %v531_v4 }
 0x18b   : > { %v2108_v12 = vpop.f32.mrf.mxu0  ;;  %v2191_v33 = vld [vmem:[#allocation2 + $0x40] sm:$0xff]  }
 0x18c   : > { %725 = vst.msk [vmem:[#allocation2 + $0x54] sm:$0xf] %vm703_vm2, %v2048_v6  ;;  %v2053_v15 = vpack.c.bf16 %v2108_v12, %v2108_v12  ;;  %2009 = vmatmul.mubr.msk.bf16.gmra.mxu1 %vm1017_vm3, %v2187_v8 }
 0x18d   : > { %v544_v16 = vpop.f32.mrf.mxu0  ;;  %1155 = vmatprep.mubr.bf16.mxu1 %v2444_v0 }
 0x18e   : > { %730 = vst.msk [vmem:[#allocation2 + $0x68] sm:$0xf] %vm703_vm2, %v2053_v15  ;;  %v2051_v17 = vpack.c.bf16 %v544_v16, %v544_v16 }
 0x18f   : > { %v2109_v18 = vpop.f32.mrf.mxu0 }
 0x190   : > { %728 = vst.msk [vmem:[#allocation2 + $0x60] sm:$0xf] %vm703_vm2, %v2051_v17  ;;  %v2054_v19 = vpack.c.bf16 %v2109_v18, %v2109_v18 }
 0x191   : > { %v547_v20 = vpop.f32.mrf.mxu0  ;;  %v2194_v36 = vld [vmem:[#allocation2 + $0x58] sm:$0xff]  }
 0x192   : > { %731 = vst.msk [vmem:[#allocation2 + $0x6c] sm:$0xf] %vm703_vm2, %v2054_v19  ;;  %v2052_v21 = vpack.c.bf16 %v547_v20, %v547_v20 }
 0x193   : > { %v2112_v23 = vpop.f32.mrf.mxu0  ;;  %v2193_v35 = vld [vmem:[#allocation2 + $0x50] sm:$0xff]  }
 0x194   : > { %729 = vst.msk [vmem:[#allocation2 + $0x64] sm:$0xf] %vm703_vm2, %v2052_v21  ;;  %v2057_v24 = vpack.c.bf16 %v2112_v23, %v2112_v23  ;;  %2010 = vmatmul.mubr.msk.bf16.gmra.mxu1 %vm1017_vm3, %v2188_v22 }
 0x195   : > { %v560_v25 = vpop.f32.mrf.mxu0  ;;  %1165 = vmatprep.mubr.bf16.mxu1 %v2444_v0 }
 0x196   : > { %734 = vst.msk [vmem:[#allocation2 + $0x78] sm:$0xf] %vm703_vm2, %v2057_v24  ;;  %v2055_v26 = vpack.c.bf16 %v560_v25, %v560_v25 }
 0x197   : > { %v2113_v27 = vpop.f32.mrf.mxu0 }
 0x198   : > { %732 = vst.msk [vmem:[#allocation2 + $0x70] sm:$0xf] %vm703_vm2, %v2055_v26  ;;  %v2058_v28 = vpack.c.bf16 %v2113_v27, %v2113_v27 }
 0x199   : > { %v563_v29 = vpop.f32.mrf.mxu0  ;;  %v2196_v38 = vld [vmem:[#allocation2 + $0x68] sm:$0xff]  }
 0x19a   : > { %735 = vst.msk [vmem:[#allocation2 + $0x7c] sm:$0xf] %vm703_vm2, %v2058_v28  ;;  %v2056_v30 = vpack.c.bf16 %v563_v29, %v563_v29 }
 0x19b   : > { %v2195_v37 = vld [vmem:[#allocation2 + $0x60] sm:$0xff]  }
 0x19c   : > { %733 = vst.msk [vmem:[#allocation2 + $0x74] sm:$0xf] %vm703_vm2, %v2056_v30  ;;  %2011 = vmatmul.mubr.msk.bf16.gmra.mxu1 %vm1017_vm3, %v2189_v31 }
 0x19d   : > { %1175 = vmatprep.mubr.bf16.mxu1 %v2444_v0 }
 0x1a1   : > { %v2198_v40 = vld [vmem:[#allocation2 + $0x78] sm:$0xff]  }
 0x1a3   : > { %v2197_v39 = vld [vmem:[#allocation2 + $0x70] sm:$0xff]  }
 0x1a4   : > { %2012 = vmatmul.mubr.msk.bf16.gmra.mxu1 %vm1017_vm3, %v2190_v32 }
 0x1a5   : > { %1185 = vmatprep.mubr.bf16.mxu1 %v2444_v0 }
 0x1ac   : > { %2013 = vmatmul.mubr.msk.bf16.gmra.mxu1 %vm1017_vm3, %v2191_v33 }
 0x1ad   : > { %1195 = vmatprep.mubr.bf16.mxu1 %v2444_v0 }
 0x1b4   : > { %2014 = vmatmul.mubr.msk.bf16.gmra.mxu1 %vm1017_vm3, %v2192_v34 }
 0x1b5   : > { %1205 = vmatprep.mubr.bf16.mxu1 %v2444_v0 }
 0x1bc   : > { %2015 = vmatmul.mubr.msk.bf16.gmra.mxu1 %vm1017_vm3, %v2193_v35 }
 0x1bd   : > { %1215 = vmatprep.mubr.bf16.mxu1 %v2444_v0 }
 0x1c4   : > { %2016 = vmatmul.mubr.msk.bf16.gmra.mxu1 %vm1017_vm3, %v2194_v36 }
 0x1c5   : > { %1225 = vmatprep.mubr.bf16.mxu1 %v2444_v0 }
 0x1cc   : > { %2017 = vmatmul.mubr.msk.bf16.gmra.mxu1 %vm1017_vm3, %v2195_v37 }
 0x1cd   : > { %1235 = vmatprep.mubr.bf16.mxu1 %v2444_v0 }
 0x1d4   : > { %2018 = vmatmul.mubr.msk.bf16.gmra.mxu1 %vm1017_vm3, %v2196_v38 }
 0x1d5   : > { %1245 = vmatprep.mubr.bf16.mxu1 %v2444_v0 }
 0x1dc   : > { %2019 = vmatmul.mubr.msk.bf16.gmra.mxu1 %vm1017_vm3, %v2197_v39 }
 0x1dd   : > { %1255 = vmatprep.mubr.bf16.mxu1 %v2444_v0 }
 0x1e4   : > { %2020 = vmatmul.mubr.msk.bf16.gmra.mxu1 %vm1017_vm3, %v2198_v40 }
 0x22c   : > { %v2747_v42 = vpop.f32.mrf.mxu1 }
 0x22e   : > { %v2749_v43 = vpop.f32.mrf.mxu1 }
 0x230   : > { %v2751_v44 = vpop.f32.mrf.mxu1 }
 0x232   : > { %v2753_v45 = vpop.f32.mrf.mxu1 }
 0x234   : > { %v2755_v46 = vpop.f32.mrf.mxu1 }
 0x235   : > { %v1266_v36 = vmax.f32 %v2747_v42, %v2755_v46 }
 0x236   : > { %v2757_v47 = vpop.f32.mrf.mxu1 }
 0x238   : > { %v2759_v48 = vpop.f32.mrf.mxu1 }
 0x239   : > { %v1267_v37 = vmax.f32 %v2751_v44, %v2759_v48 }
 0x23a   : > { %v2761_v0 = vpop.f32.mrf.mxu1 }
 0x23b   : > { %3617 = vst [vmem:[#allocation19_spill] sm:$0xff] %v2761_v0 }
 0x23c   : > { %v2763_v49 = vpop.f32.mrf.mxu1 }
 0x23d   : > { %v1268_v39 = vmax.f32 %v1266_v36, %v2763_v49 }
 0x23e   : > { %v2765_v50 = vpop.f32.mrf.mxu1 }
 0x240   : > { %v2767_v51 = vpop.f32.mrf.mxu1 }
 0x241   : > { %v1269_v40 = vmax.f32 %v1267_v37, %v2767_v51 }
 0x242   : > { %v2769_v52 = vpop.f32.mrf.mxu1 }
 0x244   : > { %v2771_v53 = vpop.f32.mrf.mxu1 }
 0x245   : > { %v1270_v5 = vmax.f32 %v1268_v39, %v2771_v53 }
 0x246   : > { %v2773_v54 = vpop.f32.mrf.mxu1 }
 0x248   : > { %v2775_v55 = vpop.f32.mrf.mxu1 }
 0x249   : > { %v1271_v11 = vmax.f32 %v1269_v40, %v2775_v55 }
 0x24a   : > { %v2777_v56 = vpop.f32.mrf.mxu1 }
 0x24c   : > { %v2779_v57 = vpop.f32.mrf.mxu1 }
 0x24d   : > { %3618 = vst [vmem:[#allocation20_spill] sm:$0xff] %v2779_v57  ;;  %v1272_v60 = vmax.f32 %v1270_v5, %v2779_v57 }
 0x24e   : > { %v2781_v58 = vpop.f32.mrf.mxu1 }
 0x250   : > { %v2783_v59 = vpop.f32.mrf.mxu1 }
 0x251   : > { %v1273_v2 = vmax.f32 %v1271_v11, %v2783_v59 }
 0x252   : > { %v2785_v61 = vpop.f32.mrf.mxu1 }
 0x254   : > { %v2787_v62 = vpop.f32.mrf.mxu1 }
 0x255   : > { %3619 = vst [vmem:[#allocation21_spill] sm:$0xff] %v2787_v62  ;;  %v1274_v10 = vmax.f32 %v1272_v60, %v2787_v62 }
 0x256   : > { %v2789_v63 = vpop.f32.mrf.mxu1 }
 0x258   : > { %v2791_v1 = vpop.f32.mrf.mxu1 }
 0x259   : > { %v1275_v36 = vmax.f32 %v1273_v2, %v2791_v1 }
 0x25a   : > { %v2793_v3 = vpop.f32.mrf.mxu1 }
 0x25c   : > { %v2795_v4 = vpop.f32.mrf.mxu1 }
 0x25d   : > { %3620 = vst [vmem:[#allocation22_spill] sm:$0xff] %v2795_v4  ;;  %v1276_v37 = vmax.f32 %v1274_v10, %v2795_v4 }
 0x25e   : > { %v2797_v6 = vpop.f32.mrf.mxu1 }
 0x260   : > { %v2799_v8 = vpop.f32.mrf.mxu1 }
 0x261   : > { %v1277_v39 = vmax.f32 %v1275_v36, %v2799_v8  ;;  %v1304_v36 = vmax.f32 %v2753_v45, %v2761_v0 }
 0x262   : > { %v2801_v12 = vpop.f32.mrf.mxu1 }
 0x264   : > { %v2803_v15 = vpop.f32.mrf.mxu1 }
 0x265   : > { %v1278_v40 = vmax.f32 %v1276_v37, %v2803_v15 }
 0x266   : > { %v2805_v16 = vpop.f32.mrf.mxu1 }
 0x268   : > { %v2807_v17 = vpop.f32.mrf.mxu1 }
 0x269   : > { %3621 = vst [vmem:[#allocation23_spill] sm:$0xff] %v2807_v17  ;;  %v1279_v5 = vmax.f32 %v1277_v39, %v2807_v17 }
 0x26a   : > { %v2809_v18 = vpop.f32.mrf.mxu1 }
 0x26c   : > { %v2811_v19 = vpop.f32.mrf.mxu1 }
 0x26d   : > { %v1280_v11 = vmax.f32 %v1278_v40, %v2811_v19  ;;  %v1303_v40 = vmax.f32 %v2749_v43, %v2757_v47 }
 0x26e   : > { %v2813_v20 = vpop.f32.mrf.mxu1 }
 0x270   : > { %v2815_v21 = vpop.f32.mrf.mxu1 }
 0x271   : > { %v1281_v60 = vmax.f32 %v1279_v5, %v2815_v21  ;;  %v1306_v5 = vmax.f32 %v1304_v36, %v2769_v52 }
 0x272   : > { %v2817_v22 = vpop.f32.mrf.mxu1 }
 0x273   : > { %v1308_v0 = vmax.f32 %v1306_v5, %v2777_v56 }
 0x274   : > { %v2819_v23 = vpop.f32.mrf.mxu1 }
 0x275   : > { %3622 = vst [vmem:[#allocation24_spill] sm:$0xff] %v2819_v23  ;;  %v1282_v2 = vmax.f32 %v1280_v11, %v2819_v23  ;;  %v1305_v23 = vmax.f32 %v1303_v40, %v2765_v50  ;;  %v1310_v36 = vmax.f32 %v1308_v0, %v2785_v61 }
 0x276   : > { %v2821_v24 = vpop.f32.mrf.mxu1 }
 0x277   : > { %v1312_v5 = vmax.f32 %v1310_v36, %v2793_v3 }
 0x278   : > { %v2823_v25 = vpop.f32.mrf.mxu1 }
 0x279   : > { %3623 = vst [vmem:[#allocation25_spill] sm:$0xff] %v2823_v25  ;;  %v1283_v10 = vmax.f32 %v1281_v60, %v2823_v25  ;;  %v1314_v0 = vmax.f32 %v1312_v5, %v2801_v12 }
 0x27a   : > { %v2825_v26 = vpop.f32.mrf.mxu1 }
 0x27c   : > { %v2827_v27 = vpop.f32.mrf.mxu1 }
 0x27d   : > { %3624 = vst [vmem:[#allocation26_spill] sm:$0xff] %v2827_v27  ;;  %v1284_v37 = vmax.f32 %v1282_v2, %v2827_v27  ;;  %v1307_v27 = vmax.f32 %v1305_v23, %v2773_v54 }
 0x27e   : > { %v2829_v28 = vpop.f32.mrf.mxu1 }
 0x27f   : > { %v1309_v40 = vmax.f32 %v1307_v27, %v2781_v58  ;;  %v1316_v27 = vmax.f32 %v1314_v0, %v2809_v18 }
 0x280   : > { %v2831_v29 = vpop.f32.mrf.mxu1 }
 0x281   : > { %3625 = vst [vmem:[#allocation27_spill] sm:$0xff] %v2831_v29  ;;  %v1285_v39 = vmax.f32 %v1283_v10, %v2831_v29  ;;  %v1311_v23 = vmax.f32 %v1309_v40, %v2789_v63 }
 0x282   : > { %v2833_v30 = vpop.f32.mrf.mxu1 }
 0x284   : > { %v2835_v31 = vpop.f32.mrf.mxu1 }
 0x285   : > { %v1286_v11 = vmax.f32 %v1284_v37, %v2835_v31 }
 0x286   : > { %v2837_v32 = vpop.f32.mrf.mxu1 }
 0x288   : > { %v2839_v33 = vpop.f32.mrf.mxu1 }
 0x289   : > { %3626 = vst [vmem:[#allocation28_spill] sm:$0xff] %v2839_v33  ;;  %v1287_v60 = vmax.f32 %v1285_v39, %v2839_v33 }
 0x28a   : > { %v2841_v34 = vpop.f32.mrf.mxu1 }
 0x28c   : > { %v2843_v35 = vpop.f32.mrf.mxu1 }
 0x28d   : > { %v1288_v2 = vmax.f32 %v1286_v11, %v2843_v35 }
 0x28e   : > { %v2849_v38 = vpop.f32.mrf.mxu1 }
 0x290   : > { %v2853_v14 = vpop.f32.mrf.mxu1 }
 0x291   : > { %3627 = vst [vmem:[#allocation29_spill] sm:$0xff] %v2853_v14  ;;  %v1289_v10 = vmax.f32 %v1287_v60, %v2853_v14 }
 0x292   : > { %v2857_v13 = vpop.f32.mrf.mxu1 }
 0x294   : > { %v2861_v41 = vpop.f32.mrf.mxu1 }
 0x295   : > { %3628 = vst [vmem:[#allocation30_spill] sm:$0xff] %v2861_v41  ;;  %v1290_v37 = vmax.f32 %v1288_v2, %v2861_v41 }
 0x296   : > { %v2865_v9 = vpop.f32.mrf.mxu1 }
 0x298   : > { %v2869_v7 = vpop.f32.mrf.mxu1 }
 0x299   : > { %3629 = vst [vmem:[#allocation31_spill] sm:$0xff] %v2869_v7  ;;  %v1291_v39 = vmax.f32 %v1289_v10, %v2869_v7  ;;  %v1313_v7 = vmax.f32 %v1311_v23, %v2797_v6 }
 0x29a   : > { %v2873_v57 = vpop.f32.mrf.mxu1 }
 0x29b   : > { %v1315_v36 = vmax.f32 %v1313_v7, %v2805_v16 }
 0x29c   : > { %v2877_v62 = vpop.f32.mrf.mxu1 }
 0x29d   : > { %3630 = vst [vmem:[#allocation32_spill] sm:$0xff] %v2877_v62  ;;  %v1292_v11 = vmax.f32 %v1290_v37, %v2877_v62  ;;  %v1318_v37 = vmax.f32 %v1316_v27, %v2817_v22 }
 0x29e   : > { %v2881_v4 = vpop.f32.mrf.mxu1 }
 0x29f   : > { %v1320_v40 = vmax.f32 %v1318_v37, %v2825_v26 }
 0x2a0   : > { %v2887_v17 = vpop.f32.mrf.mxu1 }
 0x2a1   : > { %3631 = vst [vmem:[#allocation33_spill] sm:$0xff] %v2887_v17  ;;  %v1293_v60 = vmax.f32 %v1291_v39, %v2887_v17  ;;  %v1317_v17 = vmax.f32 %v1315_v36, %v2813_v20 }
 0x2a2   : > { %v2894_v25 = vpop.f32.mrf.mxu1 }
 0x2a3   : > { %v1319_v5 = vmax.f32 %v1317_v17, %v2821_v24 }
 0x2a4   : > { %v2900_v29 = vpop.f32.mrf.mxu1 }
 0x2a5   : > { %v1294_v2 = vmax.f32 %v1292_v11, %v2900_v29  ;;  %v1322_v11 = vmax.f32 %v1320_v40, %v2833_v30  ;;  %v1321_v23 = vmax.f32 %v1319_v5, %v2829_v28 }
 0x2a6   : > { %v2906_v33 = vpop.f32.mrf.mxu1 }
 0x2a7   : > { %v1324_v0 = vmax.f32 %v1322_v11, %v2841_v34  ;;  %v1323_v7 = vmax.f32 %v1321_v23, %v2837_v32 }
 0x2a8   : > { %v2912_v14 = vpop.f32.mrf.mxu1 }
 0x2a9   : > { %v1295_v10 = vmax.f32 %v1293_v60, %v2912_v14  ;;  %v1325_v36 = vmax.f32 %v1323_v7, %v2849_v38 }
 0x2ab   : > { %v1296_v41 = vmax.f32 %v1294_v2, %v1295_v10  ;;  %v1326_v10 = vmax.f32 %v1324_v0, %v2857_v13  ;;  %v1327_v17 = vmax.f32 %v1325_v36, %v2865_v9 }
 0x2ad   : > { %v1297_v39 = vrot.slane %v1296_v41, 4  ;;  %v1328_v37 = vmax.f32 %v1326_v10, %v2873_v57  ;;  %v1329_v5 = vmax.f32 %v1327_v17, %v2881_v4 }
 0x2af   : > { %v1298_v62 = vmax.f32 %v1296_v41, %v1297_v39  ;;  %v2932_v41 = vpop.f32.mrf.mxu1  ;;  %v1330_v39 = vmax.f32 %v1328_v37, %v2894_v25  ;;  %v1331_v11 = vmax.f32 %v1329_v5, %v2906_v33 }
 0x2b1   : > { %v1299_v60 = vrot.slane %v1298_v62, 2 }
 0x2b3   : > { %v1300_v2 = vmax.f32 %v1298_v62, %v1299_v60  ;;  %v1332_v62 = vmax.f32 %v1330_v39, %v2932_v41 }
 0x2b5   : > { %v1301_v27 = vrot.slane %v1300_v2, 1  ;;  %v1333_v7 = vmax.f32 %v1331_v11, %v1332_v62 }
 0x2b7   : > { %v2936_v40 = vmax.f32 %v1300_v2, %v1301_v27  ;;  %v1334_v17 = vrot.slane %v1333_v7, 4 }
 0x2b9   : > { %v1340_v60 = vsub.f32 %v2747_v42, %v2936_v40  ;;  %v1342_v23 = vsub.f32 %v2751_v44, %v2936_v40  ;;  %v1344_v0 = vsub.f32 %v2755_v46, %v2936_v40  ;;  %v1346_v2 = vsub.f32 %v2759_v48, %v2936_v40 }
 0x2ba   : > { %v1348_v36 = vsub.f32 %v2763_v49, %v2936_v40  ;;  %v1350_v42 = vsub.f32 %v2767_v51, %v2936_v40  ;;  %v1352_v46 = vsub.f32 %v2771_v53, %v2936_v40  ;;  %v1335_v5 = vmax.f32 %v1333_v7, %v1334_v17  ;;  %v3632_v49 = vld [vmem:[#allocation20_spill] sm:$0xff]  ;;  %v3633_v53 = vld [vmem:[#allocation21_spill] sm:$0xff]  ;;  %v3636_v17 = vld [vmem:[#allocation22_spill] sm:$0xff] }
 0x2bb   : > { %v1404_v10 = vmul.f32 1.442695, %v1340_v60  ;;  %v1408_v27 = vmul.f32 1.442695, %v1342_v23  ;;  %v1412_v37 = vmul.f32 1.442695, %v1344_v0  ;;  %v1354_v48 = vsub.f32 %v2775_v55, %v2936_v40 }
 0x2bc   : > { %v1416_v44 = vmul.f32 1.442695, %v1346_v2  ;;  %v1420_v39 = vmul.f32 1.442695, %v1348_v36  ;;  %v1424_v62 = vmul.f32 1.442695, %v1350_v42  ;;  %v1356_v11 = vsub.f32 %v3632_v49, %v2936_v40 }
 0x2bd   : > { %2199 = vpow2.f32 %v1404_v10  ;;  %v1428_v60 = vmul.f32 1.442695, %v1352_v46  ;;  %v1336_v23 = vrot.slane %v1335_v5, 2  ;;  %v1358_v51 = vsub.f32 %v2783_v59, %v2936_v40 }
 0x2be   : > { %2201 = vpow2.f32 %v1408_v27  ;;  %v1432_v0 = vmul.f32 1.442695, %v1354_v48  ;;  %v1360_v2 = vsub.f32 %v3633_v53, %v2936_v40  ;;  %v1436_v7 = vmul.f32 1.442695, %v1356_v11 }
 0x2bf   : > { %2203 = vpow2.f32 %v1412_v37  ;;  %v1337_v10 = vmax.f32 %v1335_v5, %v1336_v23  ;;  %v1362_v27 = vsub.f32 %v2791_v1, %v2936_v40  ;;  %v1440_v36 = vmul.f32 1.442695, %v1358_v51 }
 0x2c0   : > { %2205 = vpow2.f32 %v1416_v44  ;;  %v1364_v59 = vsub.f32 %v3636_v17, %v2936_v40  ;;  %v1444_v42 = vmul.f32 1.442695, %v1360_v2  ;;  %v1366_v5 = vsub.f32 %v2799_v8, %v2936_v40 }
 0x2c1   : > { %2207 = vpow2.f32 %v1420_v39  ;;  %v1338_v39 = vrot.slane %v1337_v10, 1  ;;  %v1448_v1 = vmul.f32 1.442695, %v1362_v27  ;;  %v1368_v49 = vsub.f32 %v2803_v15, %v2936_v40 }
 0x2c2   : > { %2209 = vpow2.f32 %v1424_v62  ;;  %v1452_v11 = vmul.f32 1.442695, %v1364_v59  ;;  %v1456_v53 = vmul.f32 1.442695, %v1366_v5  ;;  %v1372_v15 = vsub.f32 %v2811_v19, %v2936_v40 }
 0x2c3   : > { %2211 = vpow2.f32 %v1428_v60  ;;  %v2985_v51 = vmax.f32 %v1337_v10, %v1338_v39  ;;  %v1374_v27 = vsub.f32 %v2815_v21, %v2936_v40  ;;  %v3640_v21 = vld [vmem:[#allocation24_spill] sm:$0xff] }
 0x2c4   : > { %2213 = vpow2.f32 %v1432_v0  ;;  %v3639_v0 = vld [vmem:[#allocation23_spill] sm:$0xff]  ;;  %v1376_v5 = vsub.f32 %v3640_v21, %v2936_v40 }
 0x2c5   : > { %2215 = vpow2.f32 %v1436_v7  ;;  %v1370_v8 = vsub.f32 %v3639_v0, %v2936_v40  ;;  %v1341_v59 = vsub.f32 %v2749_v43, %v2985_v51  ;;  %v1343_v39 = vsub.f32 %v2753_v45, %v2985_v51 }
 0x2c6   : > { %2217 = vpow2.f32 %v1440_v36  ;;  %v1460_v36 = vmul.f32 1.442695, %v1368_v49  ;;  %v1345_v43 = vsub.f32 %v2757_v47, %v2985_v51  ;;  %v1476_v47 = vmul.f32 1.442695, %v1376_v5 }
 0x2c7   : > { %2219 = vpow2.f32 %v1444_v42  ;;  %v1464_v42 = vmul.f32 1.442695, %v1370_v8  ;;  %v1406_v8 = vmul.f32 1.442695, %v1341_v59  ;;  %v1349_v59 = vsub.f32 %v2765_v50, %v2985_v51 }
 0x2c8   : > { %2221 = vpow2.f32 %v1448_v1  ;;  %v1468_v1 = vmul.f32 1.442695, %v1372_v15  ;;  %v1410_v15 = vmul.f32 1.442695, %v1343_v39  ;;  %v1384_v50 = vsub.f32 %v2835_v31, %v2936_v40 }
 0x2c9   : > { %2223 = vpow2.f32 %v1452_v11  ;;  %v1355_v31 = vsub.f32 %v2777_v56, %v2985_v51  ;;  %v3646_v56 = vld [vmem:[#allocation29_spill] sm:$0xff] }
 0x2ca   : > { %v2963_v55 = vpop.eup %2199  ;;  %2225 = vpow2.f32 %v1456_v53  ;;  %v3642_v53 = vld [vmem:[#allocation19_spill] sm:$0xff] }
 0x2cb   : > { %3634 = vst [vmem:[#allocation20_spill] sm:$0xff] %v2963_v55  ;;  %v2967_v37 = vpop.eup %2201  ;;  %2227 = vpow2.f32 %v1460_v36 }
 0x2cc   : > { %3635 = vst [vmem:[#allocation21_spill] sm:$0xff] %v2967_v37  ;;  %v1532_v44 = vadd.f32 %v2967_v37, %v2963_v55  ;;  %v2973_v46 = vpop.eup %2203  ;;  %2229 = vpow2.f32 %v1464_v42  ;;  %v1414_v42 = vmul.f32 1.442695, %v1345_v43 }
 0x2cd   : > { %3637 = vst [vmem:[#allocation22_spill] sm:$0xff] %v2973_v46  ;;  %v2978_v62 = vpop.eup %2205  ;;  %2231 = vpow2.f32 %v1468_v1  ;;  %v1351_v1 = vsub.f32 %v2769_v52, %v2985_v51  ;;  %v3645_v52 = vld [vmem:[#allocation28_spill] sm:$0xff] }
 0x2ce   : > { %v1533_v48 = vadd.f32 %v2973_v46, %v1532_v44  ;;  %3638 = vst [vmem:[#allocation34_spill] sm:$0xff] %v2978_v62  ;;  %v2983_v23 = vpop.eup %2207 }
 0x2cf   : > { %v2990_v7 = vpop.eup %2209 }
 0x2d0   : > { %v1534_v60 = vadd.f32 %v2978_v62, %v1533_v48  ;;  %v2997_v17 = vpop.eup %2211  ;;  %v1472_v48 = vmul.f32 1.442695, %v1374_v27  ;;  %v3643_v27 = vld [vmem:[#allocation26_spill] sm:$0xff] }
 0x2d1   : > { %v3004_v19 = vpop.eup %2213 }
 0x2d2   : > { %v1535_v2 = vadd.f32 %v2983_v23, %v1534_v60  ;;  %v3011_v11 = vpop.eup %2215  ;;  %v3641_v60 = vld [vmem:[#allocation25_spill] sm:$0xff]  ;;  %2233 = vpow2.f32 %v1472_v48 }
 0x2d3   : > { %v1378_v0 = vsub.f32 %v3641_v60, %v2936_v40  ;;  %v3018_v36 = vpop.eup %2217  ;;  %2235 = vpow2.f32 %v1406_v8  ;;  %v1422_v8 = vmul.f32 1.442695, %v1349_v59  ;;  %v1492_v59 = vmul.f32 1.442695, %v1384_v50 }
 0x2d4   : > { %v1536_v10 = vadd.f32 %v2990_v7, %v1535_v2  ;;  %v1347_v2 = vsub.f32 %v3642_v53, %v2985_v51  ;;  %v3025_v21 = vpop.eup %2219  ;;  %2237 = vpow2.f32 %v1410_v15  ;;  %v1386_v15 = vsub.f32 %v3645_v52, %v2936_v40 }
 0x2d5   : > { %v1480_v39 = vmul.f32 1.442695, %v1378_v0  ;;  %v3032_v48 = vpop.eup %2221  ;;  %2239 = vpow2.f32 %v1476_v47  ;;  %v1353_v0 = vsub.f32 %v2773_v54, %v2985_v51  ;;  %v1388_v54 = vsub.f32 %v2843_v35, %v2936_v40 }
 0x2d6   : > { %v1537_v44 = vadd.f32 %v2997_v17, %v1536_v10  ;;  %v1380_v10 = vsub.f32 %v3643_v27, %v2936_v40  ;;  %v1418_v5 = vmul.f32 1.442695, %v1347_v2  ;;  %2241 = vpow2.f32 %v1414_v42  ;;  %v3039_v27 = vpop.eup %2223 }
 0x2d7   : > { %2243 = vpow2.f32 %v1480_v39  ;;  %v3046_v47 = vpop.eup %2225  ;;  %v1359_v35 = vsub.f32 %v2785_v61, %v2985_v51  ;;  %v1434_v50 = vmul.f32 1.442695, %v1355_v31  ;;  %v3650_v61 = vld [vmem:[#allocation31_spill] sm:$0xff] }
 0x2d8   : > { %v1538_v49 = vadd.f32 %v3004_v19, %v1537_v44  ;;  %v1484_v43 = vmul.f32 1.442695, %v1380_v10  ;;  %2245 = vpow2.f32 %v1418_v5  ;;  %v1426_v10 = vmul.f32 1.442695, %v1351_v1  ;;  %v3053_v39 = vpop.eup %2227 }
 0x2d9   : > { %v1496_v1 = vmul.f32 1.442695, %v1386_v15  ;;  %v1361_v15 = vsub.f32 %v2789_v63, %v2985_v51  ;;  %v1394_v31 = vsub.f32 %v3650_v61, %v2936_v40  ;;  %v3653_v63 = vld [vmem:[#allocation32_spill] sm:$0xff] }
 0x2da   : > { %v1539_v45 = vadd.f32 %v3011_v11, %v1538_v49  ;;  %v3644_v49 = vld [vmem:[#allocation27_spill] sm:$0xff]  ;;  %2247 = vpow2.f32 %v1484_v43  ;;  %v3060_v43 = vpop.eup %2229 }
 0x2db   : > { %v1382_v60 = vsub.f32 %v3644_v49, %v2936_v40  ;;  %v1357_v49 = vsub.f32 %v2781_v58, %v2985_v51  ;;  %2249 = vpow2.f32 %v1422_v8  ;;  %v3647_v58 = vld [vmem:[#allocation30_spill] sm:$0xff]  ;;  %v3064_v8 = vpop.eup %2231 }
 0x2dc   : > { %v1540_v44 = vadd.f32 %v3018_v36, %v1539_v45  ;;  %3648 = vst [vmem:[#allocation23_spill] sm:$0xff] %v3064_v8 }
 0x2dd   : > { %v1488_v2 = vmul.f32 1.442695, %v1382_v60  ;;  %v1430_v60 = vmul.f32 1.442695, %v1353_v0  ;;  %v1500_v0 = vmul.f32 1.442695, %v1388_v54 }
 0x2de   : > { %v1541_v53 = vadd.f32 %v3025_v21, %v1540_v44 }
 0x2df   : > { %2251 = vpow2.f32 %v1488_v2  ;;  %v1438_v2 = vmul.f32 1.442695, %v1357_v49  ;;  %v1396_v49 = vsub.f32 %v3653_v63, %v2936_v40 }
 0x2e0   : > { %v1542_v45 = vadd.f32 %v3032_v48, %v1541_v53  ;;  %v1390_v53 = vsub.f32 %v3646_v56, %v2936_v40  ;;  %2253 = vpow2.f32 %v1426_v10  ;;  %v1442_v56 = vmul.f32 1.442695, %v1359_v35 }
 0x2e1   : > { %2255 = vpow2.f32 %v1492_v59  ;;  %v1363_v59 = vsub.f32 %v2793_v3, %v2985_v51 }
 0x2e2   : > { %v1543_v44 = vadd.f32 %v3039_v27, %v1542_v45  ;;  %v1392_v45 = vsub.f32 %v3647_v58, %v2936_v40  ;;  %2257 = vpow2.f32 %v1430_v60  ;;  %v1504_v10 = vmul.f32 1.442695, %v1390_v53 }
 0x2e3   : > { %2259 = vpow2.f32 %v1496_v1  ;;  %v1365_v1 = vsub.f32 %v2797_v6, %v2985_v51 }
 0x2e4   : > { %v1544_v42 = vadd.f32 %v3046_v47, %v1543_v44  ;;  %v3069_v44 = vpop.eup %2233  ;;  %2261 = vpow2.f32 %v1434_v50  ;;  %v1508_v60 = vmul.f32 1.442695, %v1392_v45  ;;  %v3654_v50 = vld [vmem:[#allocation33_spill] sm:$0xff]  ;;  %v1367_v45 = vsub.f32 %v2801_v12, %v2985_v51 }
 0x2e5   : > { %3649 = vst [vmem:[#allocation24_spill] sm:$0xff] %v3069_v44  ;;  %2263 = vpow2.f32 %v1500_v0  ;;  %v1398_v61 = vsub.f32 %v3654_v50, %v2936_v40  ;;  %v1512_v0 = vmul.f32 1.442695, %v1394_v31  ;;  %v1516_v50 = vmul.f32 1.442695, %v1396_v49 }
 0x2e6   : > { %v1545_v5 = vadd.f32 %v3053_v39, %v1544_v42  ;;  %v3073_v42 = vpop.eup %2235  ;;  %2265 = vpow2.f32 %v1438_v2  ;;  %v1450_v2 = vmul.f32 1.442695, %v1363_v59  ;;  %v1369_v31 = vsub.f32 %v2805_v16, %v2985_v51 }
 0x2e7   : > { %3651 = vst [vmem:[#allocation25_spill] sm:$0xff] %v3073_v42  ;;  %2267 = vpow2.f32 %v1504_v10  ;;  %v1371_v49 = vsub.f32 %v2809_v18, %v2985_v51 }
 0x2e8   : > { %v1546_v52 = vadd.f32 %v3060_v43, %v1545_v5  ;;  %v3078_v5 = vpop.eup %2237  ;;  %2269 = vpow2.f32 %v1442_v56  ;;  %v1462_v18 = vmul.f32 1.442695, %v1369_v31  ;;  %v1377_v31 = vsub.f32 %v2821_v24, %v2985_v51 }
 0x2e9   : > { %3652 = vst [vmem:[#allocation19_spill] sm:$0xff] %v3078_v5  ;;  %v3084_v53 = vpop.eup %2239  ;;  %v1569_v3 = vadd.f32 %v3078_v5, %v3073_v42  ;;  %2271 = vpow2.f32 %v1508_v60 }
 0x2ea   : > { %v1547_v54 = vadd.f32 %v3064_v8, %v1546_v52  ;;  %v1446_v52 = vmul.f32 1.442695, %v1361_v15  ;;  %v3089_v35 = vpop.eup %2241 }
 0x2eb   : > { %v3095_v6 = vpop.eup %2243  ;;  %v1570_v15 = vadd.f32 %v3089_v35, %v1569_v3  ;;  %v1402_v3 = vsub.f32 %v2912_v14, %v2936_v40  ;;  %v1373_v14 = vsub.f32 %v2813_v20, %v2985_v51  ;;  %v1466_v20 = vmul.f32 1.442695, %v1371_v49 }
 0x2ec   : > { %v1548_v58 = vadd.f32 %v3069_v44, %v1547_v54  ;;  %v3099_v54 = vpop.eup %2245  ;;  %v1400_v44 = vsub.f32 %v2900_v29, %v2936_v40  ;;  %2273 = vpow2.f32 %v1446_v52  ;;  %v1520_v29 = vmul.f32 1.442695, %v1398_v61 }
 0x2ed   : > { %3655 = vst [vmem:[#allocation26_spill] sm:$0xff] %v3099_v54  ;;  %v3105_v10 = vpop.eup %2247  ;;  %v1571_v59 = vadd.f32 %v3099_v54, %v1570_v15  ;;  %2275 = vpow2.f32 %v1512_v0  ;;  %v1379_v49 = vsub.f32 %v2825_v26, %v2985_v51 }
 0x2ee   : > { %v1549_v63 = vadd.f32 %v3084_v53, %v1548_v58  ;;  %v1454_v58 = vmul.f32 1.442695, %v1365_v1  ;;  %v3109_v56 = vpop.eup %2249  ;;  %2277 = vpow2.f32 %v1450_v2  ;;  %v1524_v15 = vmul.f32 1.442695, %v1400_v44 }
 0x2ef   : > { %v3115_v60 = vpop.eup %2251  ;;  %v1572_v1 = vadd.f32 %v3109_v56, %v1571_v59  ;;  %2279 = vpow2.f32 %v1516_v50  ;;  %v1375_v2 = vsub.f32 %v2817_v22, %v2985_v51  ;;  %v1470_v22 = vmul.f32 1.442695, %v1373_v14 }
 0x2f0   : > { %v1550_v12 = vadd.f32 %v3095_v6, %v1549_v63  ;;  %v1458_v63 = vmul.f32 1.442695, %v1367_v45  ;;  %v3119_v52 = vpop.eup %2253  ;;  %2281 = vpow2.f32 %v1454_v58  ;;  %v1528_v45 = vmul.f32 1.442695, %v1402_v3 }
 0x2f1   : > { %v3123_v40 = vpop.eup %2255  ;;  %v1573_v0 = vadd.f32 %v3119_v52, %v1572_v1  ;;  %2283 = vpow2.f32 %v1520_v29  ;;  %v1474_v24 = vmul.f32 1.442695, %v1375_v2  ;;  %v1381_v14 = vsub.f32 %v2829_v28, %v2985_v51 }
 0x2f2   : > { %v1551_v16 = vadd.f32 %v3105_v10, %v1550_v12  ;;  %v3127_v12 = vpop.eup %2257  ;;  %2285 = vpow2.f32 %v1458_v63  ;;  %v1383_v2 = vsub.f32 %v2833_v30, %v2985_v51 }
 0x2f3   : > { %v3131_v50 = vpop.eup %2259  ;;  %v1574_v59 = vadd.f32 %v3127_v12, %v1573_v0  ;;  %2287 = vpow2.f32 %v1524_v15 }
 0x2f4   : > { %v1552_v61 = vadd.f32 %v3115_v60, %v1551_v16  ;;  %v3135_v16 = vpop.eup %2261  ;;  %2289 = vpow2.f32 %v1462_v18 }
 0x2f5   : > { %v3139_v58 = vpop.eup %2263  ;;  %v1575_v29 = vadd.f32 %v3135_v16, %v1574_v59  ;;  %2291 = vpow2.f32 %v1528_v45 }
 0x2f6   : > { %v1553_v44 = vadd.f32 %v3123_v40, %v1552_v61  ;;  %v3143_v1 = vpop.eup %2265  ;;  %2293 = vpow2.f32 %v1466_v20 }
 0x2f7   : > { %v3147_v63 = vpop.eup %2267  ;;  %v1576_v61 = vadd.f32 %v3143_v1, %v1575_v29  ;;  %2295 = vpow2.f32 %v1470_v22  ;;  %v1482_v29 = vmul.f32 1.442695, %v1379_v49  ;;  %v1387_v49 = vsub.f32 %v2841_v34, %v2985_v51 }
 0x2f8   : > { %v1554_v3 = vadd.f32 %v3131_v50, %v1553_v44  ;;  %v3151_v0 = vpop.eup %2269  ;;  %v1478_v44 = vmul.f32 1.442695, %v1377_v31  ;;  %2297 = vpow2.f32 %v1474_v24  ;;  %v1385_v31 = vsub.f32 %v2837_v32, %v2985_v51 }
 0x2f9   : > { %v3155_v18 = vpop.eup %2271  ;;  %v1577_v26 = vadd.f32 %v3151_v0, %v1576_v61  ;;  %v1486_v61 = vmul.f32 1.442695, %v1381_v14  ;;  %v1389_v14 = vsub.f32 %v2849_v38, %v2985_v51 }
 0x2fa   : > { %v1555_v15 = vadd.f32 %v3139_v58, %v1554_v3  ;;  %v3159_v59 = vpop.eup %2273  ;;  %2299 = vpow2.f32 %v1478_v44 }
 0x2fb   : > { %v3163_v20 = vpop.eup %2275  ;;  %v1578_v28 = vadd.f32 %v3159_v59, %v1577_v26  ;;  %2301 = vpow2.f32 %v1482_v29  ;;  %v1490_v26 = vmul.f32 1.442695, %v1383_v2  ;;  %v1391_v2 = vsub.f32 %v2857_v13, %v2985_v51 }
 0x2fc   : > { %v1556_v45 = vadd.f32 %v3147_v63, %v1555_v15  ;;  %v3167_v8 = vpop.eup %2277  ;;  %2303 = vpow2.f32 %v1486_v61 }
 0x2fd   : > { %v3171_v22 = vpop.eup %2279  ;;  %v1579_v30 = vadd.f32 %v3167_v8, %v1578_v28  ;;  %v1494_v28 = vmul.f32 1.442695, %v1385_v31  ;;  %2305 = vpow2.f32 %v1490_v26  ;;  %v1393_v31 = vsub.f32 %v2865_v9, %v2985_v51 }
 0x2fe   : > { %v1557_v3 = vadd.f32 %v3155_v18, %v1556_v45  ;;  %v3175_v37 = vpop.eup %2281  ;;  %v1397_v9 = vsub.f32 %v2881_v4, %v2985_v51  ;;  %v1401_v4 = vsub.f32 %v2906_v33, %v2985_v51 }
 0x2ff   : > { %v3179_v24 = vpop.eup %2283  ;;  %v1580_v32 = vadd.f32 %v3175_v37, %v1579_v30  ;;  %v1498_v30 = vmul.f32 1.442695, %v1387_v49  ;;  %2307 = vpow2.f32 %v1494_v28  ;;  %v1506_v49 = vmul.f32 1.442695, %v1391_v2 }
 0x300   : > { %v1558_v15 = vadd.f32 %v3163_v20, %v1557_v3  ;;  %v3183_v55 = vpop.eup %2285  ;;  %v1526_v33 = vmul.f32 1.442695, %v1401_v4 }
 0x301   : > { %v3187_v44 = vpop.eup %2287  ;;  %v1581_v34 = vadd.f32 %v3183_v55, %v1580_v32  ;;  %2309 = vpow2.f32 %v1498_v30 }
 0x302   : > { %v1559_v45 = vadd.f32 %v3171_v22, %v1558_v15  ;;  %v3191_v5 = vpop.eup %2289 }
 0x303   : > { %v3195_v29 = vpop.eup %2291  ;;  %v1582_v38 = vadd.f32 %v3191_v5, %v1581_v34 }
 0x304   : > { %v1560_v3 = vadd.f32 %v3179_v24, %v1559_v45  ;;  %v3199_v42 = vpop.eup %2293  ;;  %v1502_v45 = vmul.f32 1.442695, %v1389_v14  ;;  %v1510_v14 = vmul.f32 1.442695, %v1393_v31  ;;  %v1518_v31 = vmul.f32 1.442695, %v1397_v9 }
 0x305   : > { %v1583_v32 = vadd.f32 %v3199_v42, %v1582_v38  ;;  %v3205_v13 = vpop.eup %2295 }
 0x306   : > { %v1561_v15 = vadd.f32 %v3187_v44, %v1560_v3  ;;  %3656 = vst [vmem:[#allocation27_spill] sm:$0xff] %v3205_v13  ;;  %v1395_v3 = vsub.f32 %v2873_v57, %v2985_v51  ;;  %v3210_v62 = vpop.eup %2297  ;;  %2311 = vpow2.f32 %v1502_v45  ;;  %v1399_v57 = vsub.f32 %v2894_v25, %v2985_v51 }
 0x307   : > { %v1584_v34 = vadd.f32 %v3205_v13, %v1583_v32  ;;  %3657 = vst [vmem:[#allocation28_spill] sm:$0xff] %v3210_v62  ;;  %v3215_v38 = vpop.eup %2299  ;;  %2313 = vpow2.f32 %v1506_v49  ;;  %v1403_v25 = vsub.f32 %v2932_v41, %v2985_v51 }
 0x308   : > { %v1562_v61 = vadd.f32 %v3195_v29, %v1561_v15  ;;  %v1514_v2 = vmul.f32 1.442695, %v1395_v3  ;;  %v3220_v32 = vpop.eup %2301  ;;  %2315 = vpow2.f32 %v1510_v14 }
 0x309   : > { %v1585_v28 = vadd.f32 %v3210_v62, %v1584_v34  ;;  %v1522_v34 = vmul.f32 1.442695, %v1399_v57 }
 0x30a   : > { %v1563_v26 = vrot.slane %v1562_v61, 4  ;;  %2317 = vpow2.f32 %v1514_v2 }
 0x30b   : > { %v1586_v30 = vadd.f32 %v3215_v38, %v1585_v28  ;;  %2319 = vpow2.f32 %v1518_v31 }
 0x30c   : > { %v1564_v15 = vadd.f32 %v1563_v26, %v1562_v61  ;;  %v3225_v26 = vpop.eup %2303  ;;  %2321 = vpow2.f32 %v1522_v34 }
 0x30d   : > { %v1587_v45 = vadd.f32 %v3220_v32, %v1586_v30  ;;  %v3230_v49 = vpop.eup %2305 }
 0x30e   : > { %v1565_v46 = vrot.slane %v1564_v15, 2  ;;  %v3233_v9 = vpop.eup %2307 }
 0x30f   : > { %v1588_v3 = vadd.f32 %v3225_v26, %v1587_v45  ;;  %v3236_v57 = vpop.eup %2309 }
 0x310   : > { %v1566_v61 = vadd.f32 %v1565_v46, %v1564_v15  ;;  %v1530_v15 = vmul.f32 1.442695, %v1403_v25 }
 0x311   : > { %v1589_v46 = vadd.f32 %v3230_v49, %v1588_v3 }
 0x312   : > { %v1567_v62 = vrot.slane %v1566_v61, 1 }
 0x313   : > { %v1590_v14 = vadd.f32 %v3233_v9, %v1589_v46  ;;  %v3239_v51 = vpop.eup %2311 }
 0x314   : > { %v1568_v28 = vadd.f32 %v1567_v62, %v1566_v61  ;;  %v3242_v2 = vpop.eup %2313 }
 0x315   : > { %v1591_v41 = vadd.f32 %v3236_v57, %v1590_v14  ;;  %v2316_v4 = vpop.eup %2315 }
 0x316   : > { %2323 = vrcp.f32 %v1568_v28 }
 0x317   : > { %2325 = vpow2.f32 %v1526_v33  ;;  %v1592_v62 = vadd.f32 %v3239_v51, %v1591_v41  ;;  %v2318_v31 = vpop.eup %2317 }
 0x318   : > { %2327 = vpow2.f32 %v1530_v15  ;;  %v2320_v34 = vpop.eup %2319 }
 0x319   : > { %v1593_v30 = vadd.f32 %v3242_v2, %v1592_v62  ;;  %v2322_v25 = vpop.eup %2321 }
 0x31b   : > { %v1594_v61 = vadd.f32 %v2316_v4, %v1593_v30 }
 0x31d   : > { %v1595_v45 = vadd.f32 %v2318_v31, %v1594_v61 }
 0x31f   : > { %v1596_v3 = vadd.f32 %v2320_v34, %v1595_v45 }
 0x321   : > { %v1597_v33 = vadd.f32 %v2322_v25, %v1596_v3 }
 0x323   : > { %v3245_v28 = vpop.eup %2323 }
 0x324   : > { %v1636_v46 = vmul.f32 %v3245_v28, %v3053_v39  ;;  %v1638_v15 = vmul.f32 %v3245_v28, %v3060_v43  ;;  %v2326_v14 = vpop.eup %2325  ;;  %v3253_v61 = vmul.f32 %v3245_v28, %v3187_v44  ;;  %v3257_v45 = vmul.f32 %v3245_v28, %v3195_v29 }
 0x325   : > { %v1598_v41 = vadd.f32 %v2326_v14, %v1597_v33  ;;  %v2328_v62 = vpop.eup %2327  ;;  %v3261_v39 = vmul.f32 %v3245_v28, %v3171_v22  ;;  %v3265_v43 = vmul.f32 %v3245_v28, %v3179_v24  ;;  %v3271_v44 = vmul.f32 %v3245_v28, %v3155_v18 }
 0x326   : > { %v1698_v13 = vpack.c.bf16 %v1638_v15, %v1636_v46  ;;  %v3275_v29 = vmul.f32 %v3245_v28, %v3163_v20  ;;  %v3281_v46 = vmul.f32 %v3245_v28, %v3139_v58  ;;  %v3289_v24 = vmul.f32 %v3245_v28, %v3123_v40 }
 0x327   : > { %v1599_v54 = vadd.f32 %v2328_v62, %v1598_v41  ;;  %v3295_v15 = vmul.f32 %v3245_v28, %v3131_v50  ;;  %v3299_v58 = vmul.f32 %v3245_v28, %v3105_v10  ;;  %v3305_v41 = vmul.f32 %v3245_v28, %v3115_v60 }
 0x328   : > { %v3309_v40 = vmul.f32 %v3245_v28, %v3084_v53 }
 0x329   : > { %v1600_v30 = vrot.slane %v1599_v54, 4 }
 0x32b   : > { %v1601_v3 = vadd.f32 %v1600_v30, %v1599_v54  ;;  %v3285_v54 = vmul.f32 %v3245_v28, %v3147_v63  ;;  %v3313_v30 = vmul.f32 %v3245_v28, %v3095_v6 }
 0x32d   : > { %v1602_v18 = vrot.slane %v1601_v3, 2  ;;  %v1702_v63 = vpack.c.bf16 %v3313_v30, %v3309_v40  ;;  %v3680_v30 = vld [vmem:[#allocation11_spill] sm:$0xff] }
 0x32f   : > { %v1603_v50 = vadd.f32 %v1602_v18, %v1601_v3 }
 0x331   : > { %v1604_v60 = vrot.slane %v1603_v50, 1 }
 0x333   : > { %v1605_v22 = vadd.f32 %v1604_v60, %v1603_v50  ;;  %v1634_v50 = vmul.f32 %v3245_v28, %v3046_v47 }
 0x335   : > { %2329 = vrcp.f32 %v1605_v22  ;;  %v1632_v22 = vmul.f32 %v3245_v28, %v3039_v27 }
 0x342   : > { %v3321_v33 = vpop.eup %2329 }
 0x343   : > { %v1637_v53 = vmul.f32 %v3321_v33, %v3191_v5  ;;  %v1639_v6 = vmul.f32 %v3321_v33, %v3199_v42  ;;  %v1633_v3 = vmul.f32 %v3321_v33, %v3175_v37  ;;  %v1635_v18 = vmul.f32 %v3321_v33, %v3183_v55 }
 0x344   : > { %v3336_v5 = vmul.f32 %v3321_v33, %v2326_v14  ;;  %v3339_v42 = vmul.f32 %v3321_v33, %v2328_v62  ;;  %v1629_v55 = vmul.f32 %v3321_v33, %v3159_v59  ;;  %v3344_v37 = vmul.f32 %v3321_v33, %v2320_v34 }
 0x345   : > { %v1699_v20 = vpack.c.bf16 %v1639_v6, %v1637_v53  ;;  %v1697_v10 = vpack.c.bf16 %v1635_v18, %v1633_v3  ;;  %v3350_v27 = vmul.f32 %v3321_v33, %v2316_v4  ;;  %v1631_v47 = vmul.f32 %v3321_v33, %v3167_v8 }
 0x346   : > { %v1715_v14 = vpack.c.bf16 %v3339_v42, %v3336_v5  ;;  %v3357_v62 = vmul.f32 %v3321_v33, %v2318_v31  ;;  %v3361_v59 = vmul.f32 %v3321_v33, %v3239_v51  ;;  %v3367_v4 = vmul.f32 %v3321_v33, %v3242_v2  ;;  %v3676_v42 = vld [vmem:[#allocation14_spill] sm:$0xff] }
 0x347   : > { %1716 = vmatprep.subr.bf16.mxu0 %v1699_v20  ;;  %v3371_v8 = vmul.f32 %v3321_v33, %v3233_v9  ;;  %v3381_v51 = vmul.f32 %v3321_v33, %v3225_v26  ;;  %v3385_v20 = vmul.f32 %v3321_v33, %v3230_v49  ;;  %v3389_v2 = vmul.f32 %v3321_v33, %v3215_v38 }
 0x348   : > { %1717 = vmatpush1.bf16.xpose.msra.mxu0 %v1698_v13  ;;  %v3347_v13 = vmul.f32 %v3321_v33, %v2322_v25  ;;  %v3375_v25 = vmul.f32 %v3321_v33, %v3236_v57  ;;  %v1711_v31 = vpack.c.bf16 %v3357_v62, %v3350_v27  ;;  %v1709_v9 = vpack.c.bf16 %v3367_v4, %v3361_v59 }
 0x349   : > { %1718 = vmatprep.subr.bf16.mxu0 %v1697_v10  ;;  %v3397_v10 = vmul.f32 %v3321_v33, %v3220_v32  ;;  %v1696_v26 = vpack.c.bf16 %v1634_v50, %v1632_v22  ;;  %v1705_v60 = vpack.c.bf16 %v3385_v20, %v3381_v51  ;;  %v1695_v49 = vpack.c.bf16 %v1631_v47, %v1629_v55 }
 0x34a   : > { %v1713_v34 = vpack.c.bf16 %v3347_v13, %v3344_v37  ;;  %v1707_v57 = vpack.c.bf16 %v3375_v25, %v3371_v8  ;;  %v1628_v38 = vmul.f32 %v3245_v28, %v3025_v21  ;;  %v1630_v6 = vmul.f32 %v3245_v28, %v3032_v48  ;;  %v3660_v8 = vld [vmem:[#allocation34_spill] sm:$0xff] }
 0x34b   : > { %v1703_v53 = vpack.c.bf16 %v3397_v10, %v3389_v2  ;;  %v1625_v32 = vmul.f32 %v3321_v33, %v3143_v1  ;;  %v1627_v3 = vmul.f32 %v3321_v33, %v3151_v0  ;;  %v1624_v50 = vmul.f32 %v3245_v28, %v3011_v11  ;;  %v3663_v10 = vld [vmem:[#allocation20_spill] sm:$0xff] }
 0x34c   : > { %v1694_v18 = vpack.c.bf16 %v1630_v6, %v1628_v38  ;;  %v1626_v55 = vmul.f32 %v3245_v28, %v3018_v36  ;;  %v1621_v21 = vmul.f32 %v3321_v33, %v3127_v12  ;;  %v1623_v48 = vmul.f32 %v3321_v33, %v3135_v16 }
 0x34d   : > { %v1693_v22 = vpack.c.bf16 %v1627_v3, %v1625_v32  ;;  %v1620_v0 = vmul.f32 %v3245_v28, %v2997_v17  ;;  %v1622_v13 = vmul.f32 %v3245_v28, %v3004_v19  ;;  %v1617_v11 = vmul.f32 %v3321_v33, %v3109_v56  ;;  %v3658_v19 = vld [vmem:[#allocation26_spill] sm:$0xff] }
 0x34e   : > { %v1692_v1 = vpack.c.bf16 %v1626_v55, %v1624_v50  ;;  %v1691_v37 = vpack.c.bf16 %v1623_v48, %v1621_v21  ;;  %v1619_v36 = vmul.f32 %v3321_v33, %v3119_v52  ;;  %v1616_v16 = vmul.f32 %v3245_v28, %v2983_v23  ;;  %v3659_v52 = vld [vmem:[#allocation22_spill] sm:$0xff]  ;;  %v3661_v23 = vld [vmem:[#allocation25_spill] sm:$0xff]  ;;  %v1806_v55 = vld [vmem:[%s2581_s11] sm:$0xff] }
 0x34f   : > { %v1690_v12 = vpack.c.bf16 %v1622_v13, %v1620_v0  ;;  %v1618_v47 = vmul.f32 %v3245_v28, %v2990_v7  ;;  %v1613_v17 = vmul.f32 %v3321_v33, %v3089_v35  ;;  %v1615_v62 = vmul.f32 %v3321_v33, %v3658_v19  ;;  %v3662_v7 = vld [vmem:[#allocation19_spill] sm:$0xff] }
 0x350   : > { %1719 = vmatpush1.bf16.xpose.msra.mxu0 %v1696_v26  ;;  %v1689_v27 = vpack.c.bf16 %v1619_v36, %v1617_v11  ;;  %v1612_v4 = vmul.f32 %v3245_v28, %v3659_v52  ;;  %v1614_v25 = vmul.f32 %v3245_v28, %v3660_v8  ;;  %v1609_v51 = vmul.f32 %v3321_v33, %v3661_v23  ;;  %v1808_v11 = vld [vmem:[%s2581_s11 + $0x10] sm:$0xff] }
 0x351   : > { %1720 = vmatprep.subr.bf16.mxu0 %v1695_v49  ;;  %v1688_v56 = vpack.c.bf16 %v1618_v47, %v1616_v16  ;;  %v1687_v59 = vpack.c.bf16 %v1615_v62, %v1613_v17  ;;  %v1611_v20 = vmul.f32 %v3321_v33, %v3662_v7  ;;  %v1608_v26 = vmul.f32 %v3245_v28, %v3663_v10  ;;  %v3664_v49 = vld [vmem:[#allocation21_spill] sm:$0xff]  ;;  %v1809_v16 = vld [vmem:[%s2581_s11 + $0x18] sm:$0xff]  ;;  %v1810_v62 = vld [vmem:[%s2581_s11 + $0x20] sm:$0xff] }
 0x352   : > { %v1686_v35 = vpack.c.bf16 %v1614_v25, %v1612_v4  ;;  %v1610_v38 = vmul.f32 %v3245_v28, %v3664_v49  ;;  %v3665_v32 = vpack.c.bf16 %v3257_v45, %v3253_v61  ;;  %v3666_v3 = vpack.c.bf16 %v3265_v43, %v3261_v39  ;;  %v3671_v39 = vld [vmem:[#allocation27_spill] sm:$0xff]  ;;  %v1811_v4 = vld [vmem:[%s2581_s11 + $0x28] sm:$0xff] }
 0x353   : > { %v1685_v2 = vpack.c.bf16 %v1611_v20, %v1609_v51  ;;  %v3669_v61 = vpack.c.bf16 %v3295_v15, %v3289_v24  ;;  %v3670_v45 = vpack.c.bf16 %v3305_v41, %v3299_v58  ;;  %v1641_v43 = vmul.f32 %v3321_v33, %v3671_v39  ;;  %v3674_v24 = vld [vmem:[#allocation24_spill] sm:$0xff]  ;;  %v3675_v41 = vld [vmem:[#allocation13_spill] sm:$0xff] }
 0x354   : > { %v1684_v6 = vpack.c.bf16 %v1610_v38, %v1608_v26  ;;  %v1642_v15 = vmul.f32 %v3245_v28, %v3674_v24  ;;  %v1812_v51 = vld [vmem:[%s2581_s11 + $0x30] sm:$0xff] }
 0x358   : > { %1721 = vmatpush1.bf16.xpose.msra.mxu0 %v1694_v18  ;;  %v3667_v18 = vpack.c.bf16 %v3275_v29, %v3271_v44  ;;  %v3672_v44 = vld [vmem:[#allocation28_spill] sm:$0xff] }
 0x359   : > { %1722 = vmatprep.subr.bf16.mxu0 %v1693_v22  ;;  %v3668_v22 = vpack.c.bf16 %v3285_v54, %v3281_v46  ;;  %v1643_v29 = vmul.f32 %v3321_v33, %v3672_v44  ;;  %v3673_v46 = vld [vmem:[#allocation23_spill] sm:$0xff] }
 0x35a   : > { %v1640_v54 = vmul.f32 %v3245_v28, %v3673_v46  ;;  %v3677_v33 = vld [vmem:[#allocation15_spill] sm:$0xff]  ;;  %v1797_v28 = vstv %s1788_s21 }
 0x35b   : > { %v1701_v5 = vpack.c.bf16 %v1643_v29, %v1641_v43 }
 0x35c   : > { %v1700_v58 = vpack.c.bf16 %v1642_v15, %v1640_v54 }
 0x360   : > { %1723 = vmatpush1.bf16.xpose.msra.mxu0 %v1692_v1  ;;  %v1807_v1 = vld [vmem:[%s2581_s11 + $0x8] sm:$0xff] }
 0x361   : > { %1724 = vmatprep.subr.bf16.mxu0 %v1691_v37 }
 0x368   : > { %1725 = vmatpush1.bf16.xpose.msra.mxu0 %v1690_v12 }
 0x369   : > { %1726 = vmatprep.subr.bf16.mxu0 %v1689_v27 }
 0x370   : > { %1727 = vmatpush1.bf16.xpose.msra.mxu0 %v1688_v56 }
 0x371   : > { %1728 = vmatprep.subr.bf16.mxu0 %v1687_v59 }
 0x378   : > { %1729 = vmatpush1.bf16.xpose.msra.mxu0 %v1686_v35 }
 0x379   : > { %1730 = vmatprep.subr.bf16.mxu0 %v1685_v2  ;;  %v1813_v2 = vld [vmem:[%s2581_s11 + $0x38] sm:$0xff]  ;;  %s2445_s11 = smov [#allocation8]  }
 0x37a   : > { %s2363_s25 = sshll.u32 %s2445_s11, 4  ;;  %s2364_s25 = int_to_ptr.vmem [resolvable:$false] %s2363_s25 }
 0x37b   : > { %s2365_s6 = scalar_lea.vmem %s2364_s25, 2048  ;;  %p2366_p1 = scmp.lt.s32.totalorder %s3508_s22, %s2364_s25 }
 0x37c   : > { %p2367_p3 = scmp.lt.s32.totalorder %s2365_s6, %s2359_s29 }
 0x37e   : > { %p2368_p5 = por %p2367_p3, %p2366_p1 }
 0x380   : > { %1731 = vmatpush1.bf16.xpose.msra.mxu0 %v1684_v6  ;;  %p2369_p6 = pnand %p2368_p5, %p2362_p0 }
 0x381   : > { %1732 = vmatprep.subr.bf16.mxu0 %v1715_v14  ;;  %v897_v14 = vadd.f32 %v3676_v42, %v3675_v41 }
 0x388   : > { %1733 = vmatpush2.bf16.xpose.msra.mxu0 %v3665_v32 }
 0x389   : > { %1734 = vmatprep.subr.bf16.mxu0 %v1713_v34  ;;  %v3678_v34 = vld [vmem:[#allocation18_spill] sm:$0xff] }
 0x390   : > { %1735 = vmatpush2.bf16.xpose.msra.mxu0 %v3666_v3 }
 0x391   : > { %1736 = vmatprep.subr.bf16.mxu0 %v1711_v31  ;;  %v901_v31 = vadd.f32 %v3678_v34, %v3677_v33 }
 0x393   : > { %v1683_v40 = vpack.c.bf16 %v901_v31, %v897_v14 }
 0x398   : > { %1737 = vmatpush2.bf16.xpose.msra.mxu0 %v3667_v18 }
 0x399   : > { %1738 = vmatprep.subr.bf16.mxu0 %v1709_v9 }
 0x3a0   : > { %1739 = vmatpush2.bf16.xpose.msra.mxu0 %v3668_v22 }
 0x3a1   : > { %1740 = vmatprep.subr.bf16.mxu0 %v1707_v57  ;;  %v3682_v57 = vld [vmem:[#allocation17_spill] sm:$0xff] }
 0x3a8   : > { %1741 = vmatpush2.bf16.xpose.msra.mxu0 %v3669_v61 }
 0x3a9   : > { %1742 = vmatprep.subr.bf16.mxu0 %v1705_v60  ;;  %v3683_v60 = vld [vmem:[#allocation16_spill] sm:$0xff] }
 0x3b0   : > { %1743 = vmatpush2.bf16.xpose.msra.mxu0 %v3670_v45 }
 0x3b1   : > { %1744 = vmatprep.subr.bf16.mxu0 %v1703_v53  ;;  %v3684_v53 = vpack.c.bf16 %v3682_v57, %v3683_v60 }
 0x3b8   : > { %1745 = vmatpush2.bf16.xpose.msra.mxu0 %v1702_v63  ;;  %v3679_v63 = vld [vmem:[#allocation12_spill] sm:$0xff] }
 0x3b9   : > { %1746 = vmatprep.subr.bf16.mxu0 %v1701_v5  ;;  %v3681_v9 = vpack.c.bf16 %v3679_v63, %v3680_v30 }
 0x3c0   : > { %1747 = vmatpush2.bf16.xpose.msra.mxu0 %v1700_v58 }
 0x3c7   : > { %1749 = vmatmul.mubr.bf16.vlgmr.msra.gmra.mxu0 %v3681_v9 }
 0x3c8   : > { %1758 = vmatprep.mubr.bf16.mxu0 %v1683_v40 }
 0x3cf   : > { %1759 = vmatmul.mubr.bf16.gmra.mxu0 %v3684_v53 }
 0x487   : > { %v1750_v50 = vpop.f32.mrf.mxu0 }
 0x488   : > { %v1798_v21 = vmul.f32 %v1797_v28, %v1750_v50 }
 0x489   : > { %v1752_v48 = vpop.f32.mrf.mxu0 }
 0x48a   : > { %v1814_v37 = vadd.f32 %v1806_v55, %v1798_v21  ;;  %v1799_v0 = vmul.f32 %v1797_v28, %v1752_v48 }
 0x48b   : > { %v1754_v13 = vpop.f32.mrf.mxu0 }
 0x48c   : > { %1822 = vst [vmem:[%s3494_s19] sm:$0xff] %v1814_v37  ;;  %v1815_v36 = vadd.f32 %v1807_v1, %v1799_v0  ;;  %v1800_v12 = vmul.f32 %v1797_v28, %v1754_v13 }
 0x48d   : > { %v1756_v27 = vpop.f32.mrf.mxu0 }
 0x48e   : > { %1823 = vst [vmem:[%s3494_s19 + $0x8] sm:$0xff] %v1815_v36  ;;  %v1816_v47 = vadd.f32 %v1808_v11, %v1800_v12  ;;  %v1801_v17 = vmul.f32 %v1797_v28, %v1756_v27 }
 0x48f   : > { %v1760_v19 = vpop.f32.mrf.mxu0 }
 0x490   : > { %1824 = vst [vmem:[%s3494_s19 + $0x10] sm:$0xff] %v1816_v47  ;;  %v1817_v56 = vadd.f32 %v1809_v16, %v1801_v17  ;;  %v1802_v59 = vmul.f32 %v1797_v28, %v1760_v19 }
 0x491   : > { %v1762_v52 = vpop.f32.mrf.mxu0 }
 0x492   : > { %1825 = vst [vmem:[%s3494_s19 + $0x18] sm:$0xff] %v1817_v56  ;;  %v1818_v8 = vadd.f32 %v1810_v62, %v1802_v59  ;;  %v1803_v25 = vmul.f32 %v1797_v28, %v1762_v52 }
 0x493   : > { %v1764_v23 = vpop.f32.mrf.mxu0 }
 0x494   : > { %1826 = vst [vmem:[%s3494_s19 + $0x20] sm:$0xff] %v1818_v8  ;;  %v1819_v7 = vadd.f32 %v1811_v4, %v1803_v25  ;;  %v1804_v20 = vmul.f32 %v1797_v28, %v1764_v23 }
 0x495   : > { %v1766_v35 = vpop.f32.mrf.mxu0 }
 0x496   : > { %1827 = vst [vmem:[%s3494_s19 + $0x28] sm:$0xff] %v1819_v7  ;;  %v1820_v10 = vadd.f32 %v1812_v51, %v1804_v20  ;;  %v1805_v26 = vmul.f32 %v1797_v28, %v1766_v35 }
 0x498   : > { %1828 = vst [vmem:[%s3494_s19 + $0x30] sm:$0xff] %v1820_v10  ;;  %v1821_v49 = vadd.f32 %v1813_v2, %v1805_v26 }
 0x49a   : > { %1829 = vst [vmem:[%s3494_s19 + $0x38] sm:$0xff] %v1821_v49 }
 0x49b   : > { %2372 = shalt.err (!%p2369_p6)
}
 0x49c   : > { %s2373_s9 = scalar_lea.hbm %s3514_s14, 1024  ;;  %s2377_s19 = scalar_lea.hbm %s3571_s7, 2048 }
 0x49d   : > { %p2374_p7 = scmp.ne.s32.totalorder %s3514_s14, %s2373_s9  ;;  %p2378_p13 = scmp.lt.s32.totalorder %s3514_s14, %s3571_s7 }
 0x49e   : > { %p2379_p2 = scmp.lt.s32.totalorder %s2377_s19, %s2373_s9 }
 0x49f   : > { %p2375_p10 = pnand %p2374_p7, %p2542_p9 }
 0x4a0   : > { %p2380_p8 = por %p2379_p2, %p2378_p13 }
 0x4a1   : > { %p2376_p4 = pneg %p2375_p10 }
 0x4a3   : > { %p2381_p12 = pnand %p2380_p8, %p2376_p4 }
 0x4a5   : > { %2384 = shalt.err (!%p2381_p12)
}
 0x4a6   : > { %s2446_s24 = smov 256   ;;  %s2447_s29 = smov 16  }
 0x4a7   : > { %2116 = dma.vmem_to_hbm [thread:$0]  (%p2542_p9), %s3508_s22, 1024, %s3514_s14, %s1831_s23, %s2446_s24, %s2446_s24, %s2447_s29  }
 0x4a8 PF: > { %s1859_s11 = sand.u32 1, %s2419_s26   ;;  %p3685_p0 = scmp.ge.s32.totalorder %s2439_s8, 2 }
 0x4a9   : > { %s1860_s25 = scalar_lea.sflag [#allocation7], %s1859_s11 }
 0x4aa   : > { %p2123_p1 = pnand %p3685_p0, %p2549_p11 }
 0x4ac   : > { %p2124_p3 = pneg %p2123_p1 }
 0x4ae   : > { %2414 = dma.done.wait (%p2124_p3), %s1860_s25, 1024  }
 0x4af   : > { %2416 = vsyncadd (%p2124_p3), %s1860_s25, 4294966272  ;;  %s24_s8 = sadd.s32 1, %s2439_s8   ;;  %s3686_s26 = smov %s2423_s27 }
 0x4b0   : > { %p21_p5 = scmp.ge.s32.totalorder %s24_s8, 4   ;;  %s3687_s27 = smov %s2427_s28 }
 0x4b1   : > { %s3688_s28 = smov %s2547_s16  ;;  %s3689_s29 = smov %s2435_s30 }
 0x4b2   : > { %s3690_s30 = smov %s3692_s10  ;;  %23 = sbr.rel (!%p21_p5) target bundleno = 8 (0x8), region = 102 }
 0x4b7   :  { %1865 = vsyncpa [#allocation6], 1 }
 0x4b8   :  { %1867 = vsyncpa [#allocation6 + $0x1], 1 }
 0x4b9   :  { %1868 = vsyncpa [#allocation7], 1 }
 0x4ba   :  { %1870 = vsyncpa [#allocation7 + $0x1], 1 }

</bundles_post_ra>
